<compile_context>
chip_gen: v6e
topology: v6e:2x2x1
jax: 0.10.0
libtpu: 0.0.40
codegen_flags: <defaults>
</compile_context>

<pallas_src>
import functools

import jax
import jax.numpy as jnp
import numpy as np
from jax import lax
from jax.experimental import pallas as pl
from jax.experimental.pallas import tpu as pltpu

EPS = 1e-5
_VMEM_LIMIT = 48 * 1024 * 1024  # explicit scoped-VMEM budget (< v7x 64 MiB phys)


def _pick_tile_m(m):
    """Largest sublane-friendly row tile that divides M."""
    for t in (1024, 512, 256, 128, 64, 32, 16, 8):
        if m % t == 0:
            return t
    return m


def _compiler_params():
    return pltpu.CompilerParams(
        dimension_semantics=("parallel",),
        vmem_limit_bytes=_VMEM_LIMIT)


# ----------------------------- Pallas kernels ------------------------------ #
def _gemm_stats_kernel(x_ref, w_ref, y_ref, sum_ref, ss_ref):
    """(tm,K)@(K,C) bf16 -> f32, plus per-tile channel sum / sum-of-squares."""
    y = jnp.dot(x_ref[...], w_ref[...], preferred_element_type=jnp.float32)
    y_ref[...] = y
    c = y.shape[1]
    sum_ref[...] = jnp.broadcast_to(jnp.sum(y, axis=0, keepdims=True), (8, c))
    ss_ref[...] = jnp.broadcast_to(jnp.sum(y * y, axis=0, keepdims=True), (8, c))


def _conv3x3_stats_kernel(h, w, c, x_ref, w_ref, y_ref, sum_ref, ss_ref):
    """3x3 / stride-1 conv of one zero-padded image as 9 accumulated MXU dots."""
    xb = x_ref[0].astype(jnp.float32)                 # (h+2, w+2, c)
    acc = jnp.zeros((h * w, c), jnp.float32)
    for kh in range(3):
        for kw in range(3):
            xs = xb[kh:kh + h, kw:kw + w, :].reshape(h * w, c)
            acc = acc + jnp.dot(xs.astype(jnp.bfloat16), w_ref[kh * 3 + kw],
                                preferred_element_type=jnp.float32)
    y_ref[...] = acc
    sum_ref[...] = jnp.broadcast_to(jnp.sum(acc, axis=0, keepdims=True), (8, c))
    ss_ref[...] = jnp.broadcast_to(jnp.sum(acc * acc, axis=0, keepdims=True), (8, c))


def _bn_relu_kernel(y_ref, scale_ref, shift_ref, o_ref):
    o = jnp.maximum(y_ref[...] * scale_ref[...] + shift_ref[...], 0.0)
    o_ref[...] = o.astype(o_ref.dtype)


def _bn_add_relu_kernel(y_ref, scale_ref, shift_ref, res_ref, o_ref):
    o = jnp.maximum(y_ref[...] * scale_ref[...] + shift_ref[...] + res_ref[...], 0.0)
    o_ref[...] = o.astype(o_ref.dtype)


# --------------------------- pallas_call wrappers --------------------------- #
def _gemm_with_stats(x2d, w):
    """Tiled (M,K)@(K,C) with fused per-tile BN partial statistics."""
    m, k = x2d.shape
    c = w.shape[1]
    tm = _pick_tile_m(m)
    grid = m // tm
    flops = 2 * m * k * c
    bytes_accessed = int(x2d.size * 2 + w.size * 2 + m * c * 4 + 2 * grid * 8 * c * 4)
    return pl.pallas_call(
        _gemm_stats_kernel,
        out_shape=(jax.ShapeDtypeStruct((m, c), jnp.float32),
                   jax.ShapeDtypeStruct((grid * 8, c), jnp.float32),
                   jax.ShapeDtypeStruct((grid * 8, c), jnp.float32)),
        grid_spec=pltpu.PrefetchScalarGridSpec(
            num_scalar_prefetch=0,
            grid=(grid,),
            in_specs=[pl.BlockSpec((tm, k), lambda i: (i, 0)),
                      pl.BlockSpec((k, c), lambda i: (0, 0))],
            out_specs=[pl.BlockSpec((tm, c), lambda i: (i, 0)),
                       pl.BlockSpec((8, c), lambda i: (i, 0)),
                       pl.BlockSpec((8, c), lambda i: (i, 0))]),
        compiler_params=_compiler_params(),
        cost_estimate=pl.CostEstimate(flops=flops, transcendentals=0,
                                      bytes_accessed=bytes_accessed),
    )(x2d, w)


def _conv3x3_with_stats(x_pad, w2_flat, h, w):
    """3x3 conv (stride 1, pad 1), grid over batch; fused BN partial stats."""
    n = x_pad.shape[0]
    c = x_pad.shape[3]
    m = n * h * w
    flops = 2 * m * 9 * c * c
    bytes_accessed = int(x_pad.size * 2 + w2_flat.size * 2 + m * c * 4 + 2 * n * 8 * c * 4)
    kernel = functools.partial(_conv3x3_stats_kernel, h, w, c)
    return pl.pallas_call(
        kernel,
        out_shape=(jax.ShapeDtypeStruct((m, c), jnp.float32),
                   jax.ShapeDtypeStruct((n * 8, c), jnp.float32),
                   jax.ShapeDtypeStruct((n * 8, c), jnp.float32)),
        grid_spec=pltpu.PrefetchScalarGridSpec(
            num_scalar_prefetch=0,
            grid=(n,),
            in_specs=[pl.BlockSpec((1, h + 2, w + 2, c), lambda i: (i, 0, 0, 0)),
                      pl.BlockSpec((9, c, c), lambda i: (0, 0, 0))],
            out_specs=[pl.BlockSpec((h * w, c), lambda i: (i, 0)),
                       pl.BlockSpec((8, c), lambda i: (i, 0)),
                       pl.BlockSpec((8, c), lambda i: (i, 0))]),
        compiler_params=_compiler_params(),
        cost_estimate=pl.CostEstimate(flops=flops, transcendentals=0,
                                      bytes_accessed=bytes_accessed),
    )(x_pad, w2_flat)


def _bn_act(y, scale, shift, residual=None, out_dtype=jnp.bfloat16):
    """Tiled  max(y*scale + shift (+res), 0)  epilogue."""
    m, c = y.shape
    tm = _pick_tile_m(m)
    grid = m // tm
    in_specs = [pl.BlockSpec((tm, c), lambda i: (i, 0)),
                pl.BlockSpec((1, c), lambda i: (0, 0)),
                pl.BlockSpec((1, c), lambda i: (0, 0))]
    args = [y, scale, shift]
    kernel = _bn_relu_kernel
    if residual is not None:
        in_specs.append(pl.BlockSpec((tm, c), lambda i: (i, 0)))
        args.append(residual)
        kernel = _bn_add_relu_kernel
    return pl.pallas_call(
        kernel,
        out_shape=jax.ShapeDtypeStruct((m, c), out_dtype),
        grid_spec=pltpu.PrefetchScalarGridSpec(
            num_scalar_prefetch=0,
            grid=(grid,),
            in_specs=in_specs,
            out_specs=pl.BlockSpec((tm, c), lambda i: (i, 0))),
        compiler_params=_compiler_params(),
    )(*args)


# ------------------------------ glue (JAX) ---------------------------------- #
def _bn_scale_shift(sum_part, ss_part, m_rows, gamma, beta):
    """Combine per-tile partial sums -> global batch-stats affine (scale, shift)."""
    total = jnp.sum(sum_part, axis=0, keepdims=True) * (1.0 / 8.0)     # (1, C)
    total_sq = jnp.sum(ss_part, axis=0, keepdims=True) * (1.0 / 8.0)   # (1, C)
    mean = total / m_rows
    var = jnp.maximum(total_sq / m_rows - mean * mean, 0.0)
    scale = gamma * lax.rsqrt(var + EPS)
    shift = beta - mean * scale
    return scale, shift


def _im2col_3x3(x_nhwc):
    """Fallback im2col (only used when W % 8 != 0); column order (kh, kw, ci)."""
    n, h, w, c = x_nhwc.shape
    xp = jnp.pad(x_nhwc, ((0, 0), (1, 1), (1, 1), (0, 0)))
    cols = []
    for kh in range(3):
        for kw in range(3):
            cols.append(xp[:, kh:kh + h, kw:kw + w, :])
    return jnp.concatenate(cols, axis=-1).reshape(n * h * w, 9 * c)


def init_bottleneck_params(key, inplanes, planes, base_width=64, groups=1):
    width = int(planes * (base_width / 64.0)) * groups
    out_ch = planes * 4  # expansion = 4
    ks = jax.random.split(key, 9)
    p = {
        "w1": jax.random.normal(ks[0], (inplanes, width), jnp.float32) * 0.1,     # 1x1
        "w2": jax.random.normal(ks[1], (3, 3, width, width), jnp.float32) * 0.1,  # 3x3 HWIO
        "w3": jax.random.normal(ks[2], (width, out_ch), jnp.float32) * 0.1,       # 1x1
        "g1": 1.0 + 0.1 * jax.random.normal(ks[3], (1, width), jnp.float32),
        "b1": 0.1 * jax.random.normal(ks[4], (1, width), jnp.float32),
        "g2": 1.0 + 0.1 * jax.random.normal(ks[5], (1, width), jnp.float32),
        "b2": 0.1 * jax.random.normal(ks[6], (1, width), jnp.float32),
        "g3": 1.0 + 0.1 * jax.random.normal(ks[7], (1, out_ch), jnp.float32),
        "b3": 0.1 * jax.random.normal(ks[8], (1, out_ch), jnp.float32),
    }
    return p, width, out_ch


@jax.jit
def bottleneck_pallas(x_nchw, params):
    """Bottleneck forward. x_nchw: (N, inplanes, H, W); returns same layout."""
    n, cin, h, w = x_nchw.shape
    x_nhwc = jnp.transpose(x_nchw, (0, 2, 3, 1)).astype(jnp.float32)
    m = n * h * w
    x2d = x_nhwc.reshape(m, cin)

    width = params["w1"].shape[1]
    out_ch = params["w3"].shape[1]

    w1 = params["w1"].astype(jnp.bfloat16)
    w2 = params["w2"].reshape(9, width, width).astype(jnp.bfloat16)  # (kh*3+kw, ci, co)
    w3 = params["w3"].astype(jnp.bfloat16)

    # ---- stage 1: conv1x1 (GEMM) -> BN1 -> ReLU ----
    y1, s1, ss1 = _gemm_with_stats(x2d.astype(jnp.bfloat16), w1)
    sc1, sh1 = _bn_scale_shift(s1, ss1, m, params["g1"], params["b1"])
    h1 = _bn_act(y1, sc1, sh1, out_dtype=jnp.bfloat16)              # (m, width) bf16

    # ---- stage 2: conv3x3 (stride 1, pad 1) -> BN2 -> ReLU ----
    h1_img = h1.reshape(n, h, w, width)
    if w % 8 == 0:
        h1_pad = jnp.pad(h1_img, ((0, 0), (1, 1), (1, 1), (0, 0)))
        y2, s2, ss2 = _conv3x3_with_stats(h1_pad, w2, h, w)
    else:
        # TODO(synk): in-kernel halo conv needs W % 8 == 0; fall back to im2col GEMM.
        patches = _im2col_3x3(h1_img).astype(jnp.bfloat16)
        y2, s2, ss2 = _gemm_with_stats(patches, w2.reshape(9 * width, width))
    sc2, sh2 = _bn_scale_shift(s2, ss2, m, params["g2"], params["b2"])
    h2 = _bn_act(y2, sc2, sh2, out_dtype=jnp.bfloat16)              # (m, width) bf16

    # ---- stage 3: conv1x1 (GEMM) -> BN3 -> (+identity) -> ReLU ----
    # downsample=None  =>  identity = x  (requires inplanes == planes*4)
    y3, s3, ss3 = _gemm_with_stats(h2, w3)
    sc3, sh3 = _bn_scale_shift(s3, ss3, m, params["g3"], params["b3"])
    out2d = _bn_act(y3, sc3, sh3, residual=x2d, out_dtype=jnp.float32)

    out_nhwc = out2d.reshape(n, h, w, out_ch)
    return jnp.transpose(out_nhwc, (0, 3, 1, 2))


# --------------------------- pure-JAX reference ------------------------------ #
def _bn_train(y_nhwc, gamma, beta):
    mean = jnp.mean(y_nhwc, axis=(0, 1, 2), keepdims=True)
    var = jnp.mean((y_nhwc - mean) ** 2, axis=(0, 1, 2), keepdims=True)
    return (y_nhwc - mean) * lax.rsqrt(var + EPS) * gamma.reshape(1, 1, 1, -1) \
        + beta.reshape(1, 1, 1, -1)


def bottleneck_reference(x_nchw, params):
    """Same math/quantization choices (bf16 conv operands, f32 accumulation)."""
    x = jnp.transpose(x_nchw, (0, 2, 3, 1)).astype(jnp.float32)  # NHWC
    dn = ("NHWC", "HWIO", "NHWC")
    width = params["w1"].shape[1]
    w1 = params["w1"].reshape(1, 1, -1, width).astype(jnp.bfloat16)
    w2 = params["w2"].astype(jnp.bfloat16)
    w3 = params["w3"].reshape(1, 1, width, -1).astype(jnp.bfloat16)

    def conv(inp, wgt, pad):
        return lax.conv_general_dilated(inp.astype(jnp.bfloat16), wgt, (1, 1), pad,
                                        dimension_numbers=dn,
                                        preferred_element_type=jnp.float32)

    o = conv(x, w1, "VALID")
    o = jnp.maximum(_bn_train(o, params["g1"], params["b1"]), 0.0)
    o = conv(o, w2, [(1, 1), (1, 1)])
    o = jnp.maximum(_bn_train(o, params["g2"], params["b2"]), 0.0)
    o = conv(o, w3, "VALID")
    o = _bn_train(o, params["g3"], params["b3"])
    o = jnp.maximum(o + x, 0.0)
    return jnp.transpose(o, (0, 3, 1, 2))


# ----------------------------------- main ------------------------------------ #
if __name__ == "__main__":
    # Small shapes: inplanes = planes * expansion so downsample=None is valid.
    N, H, W = 2, 8, 8
    planes = 8
    inplanes = planes * 4  # 32

    key = jax.random.PRNGKey(0)
    k_x, k_p = jax.random.split(key)
    x = jax.random.normal(k_x, (N, inplanes, H, W), jnp.float32)
    params, width, out_ch = init_bottleneck_params(k_p, inplanes, planes)

    out = bottleneck_pallas(x, params)
    out = jax.block_until_ready(out)

    ref = bottleneck_reference(x, params)
    np.testing.assert_allclose(np.asarray(out), np.asarray(ref),
                               rtol=2e-3, atol=2e-3)
    assert out.shape == (N, planes * 4, H, W)

    print("KERNEL_OK")
</pallas_src>

<mosaic_0001>
module attributes {stable_mosaic.version = 11 : i64} {
  func.func @_gemm_stats_kernel(%arg0: i32, %arg1: memref<128x32xbf16, #tpu.memory_space<vmem>>, %arg2: memref<32x8xbf16, #tpu.memory_space<vmem>>, %arg3: memref<128x8xf32, #tpu.memory_space<vmem>>, %arg4: memref<8x8xf32, #tpu.memory_space<vmem>>, %arg5: memref<8x8xf32, #tpu.memory_space<vmem>>) attributes {dimension_semantics = [#tpu.dimension_semantics<parallel>], iteration_bounds = array<i64: 1>, scalar_prefetch = 0 : i64, scratch_operands = 0 : i64, tpu.core_type = #tpu.core_type<tc>, window_params = [{transform_indices = @transform_0, window_bounds = array<i64: 128, 32>}, {pipeline_mode = #tpu.pipeline_mode<synchronous>, transform_indices = @transform_1, window_bounds = array<i64: 32, 8>}, {transform_indices = @transform_2, window_bounds = array<i64: 128, 8>}, {transform_indices = @transform_3, window_bounds = array<i64: 8, 8>}, {transform_indices = @transform_4, window_bounds = array<i64: 8, 8>}]} {
    %c0 = arith.constant 0 : index
    %c0_0 = arith.constant 0 : index
    %0 = vector.load %arg1[%c0, %c0_0] : memref<128x32xbf16, #tpu.memory_space<vmem>>, vector<128x32xbf16>
    %c0_1 = arith.constant 0 : index
    %c0_2 = arith.constant 0 : index
    %1 = vector.load %arg2[%c0_1, %c0_2] : memref<32x8xbf16, #tpu.memory_space<vmem>>, vector<32x8xbf16>
    %cst = arith.constant dense<0.000000e+00> : vector<128x8xf32>
    %2 = tpu.matmul %0, %1, %cst {dimension_numbers = #tpu.dot_dimension_numbers<[1], [0], [0], [1], [0, 0, 1, 1], [], []>} : vector<128x32xbf16>, vector<32x8xbf16>, vector<128x8xf32> -> vector<128x8xf32>
    %c0_3 = arith.constant 0 : index
    %c0_4 = arith.constant 0 : index
    %3 = vector.load %arg3[%c0_3, %c0_4] : memref<128x8xf32, #tpu.memory_space<vmem>>, vector<128x8xf32>
    tpu.vector_store %arg3[%c0_3, %c0_4], %2 {strides = array<i32>} : memref<128x8xf32, #tpu.memory_space<vmem>>, vector<128x8xf32>,
    %cst_5 = arith.constant dense<0.000000e+00> : vector<8xf32>
    %4 = vector.multi_reduction <add>, %2, %cst_5 [0] : vector<128x8xf32> to vector<8xf32>
    %5 = vector.shape_cast %4 : vector<8xf32> to vector<1x8xf32>
    %6 = vector.shape_cast %5 : vector<1x8xf32> to vector<1x8xf32>
    %7 = vector.broadcast %6 : vector<1x8xf32> to vector<8x8xf32>
    %c0_6 = arith.constant 0 : index
    %c0_7 = arith.constant 0 : index
    %8 = vector.load %arg4[%c0_6, %c0_7] : memref<8x8xf32, #tpu.memory_space<vmem>>, vector<8x8xf32>
    tpu.vector_store %arg4[%c0_6, %c0_7], %7 {strides = array<i32>} : memref<8x8xf32, #tpu.memory_space<vmem>>, vector<8x8xf32>,
    %9 = arith.mulf %2, %2 : vector<128x8xf32>
    %cst_8 = arith.constant dense<0.000000e+00> : vector<8xf32>
    %10 = vector.multi_reduction <add>, %9, %cst_8 [0] : vector<128x8xf32> to vector<8xf32>
    %11 = vector.shape_cast %10 : vector<8xf32> to vector<1x8xf32>
    %12 = vector.shape_cast %11 : vector<1x8xf32> to vector<1x8xf32>
    %13 = vector.broadcast %12 : vector<1x8xf32> to vector<8x8xf32>
    %c0_9 = arith.constant 0 : index
    %c0_10 = arith.constant 0 : index
    %14 = vector.load %arg5[%c0_9, %c0_10] : memref<8x8xf32, #tpu.memory_space<vmem>>, vector<8x8xf32>
    tpu.vector_store %arg5[%c0_9, %c0_10], %13 {strides = array<i32>} : memref<8x8xf32, #tpu.memory_space<vmem>>, vector<8x8xf32>,
    return
  }
  func.func @transform_0(%arg0: i32) -> (i32, i32) {
    %c0_i32 = arith.constant 0 : i32
    %c0_i32_0 = arith.constant 0 : i32
    return %arg0, %c0_i32 : i32, i32
  }
  func.func @transform_1(%arg0: i32) -> (i32, i32) {
    %c0_i32 = arith.constant 0 : i32
    %c0_i32_0 = arith.constant 0 : i32
    %c0_i32_1 = arith.constant 0 : i32
    return %c0_i32, %c0_i32_0 : i32, i32
  }
  func.func @transform_2(%arg0: i32) -> (i32, i32) {
    %c0_i32 = arith.constant 0 : i32
    %c0_i32_0 = arith.constant 0 : i32
    return %arg0, %c0_i32 : i32, i32
  }
  func.func @transform_3(%arg0: i32) -> (i32, i32) {
    %c0_i32 = arith.constant 0 : i32
    %c0_i32_0 = arith.constant 0 : i32
    return %arg0, %c0_i32 : i32, i32
  }
  func.func @transform_4(%arg0: i32) -> (i32, i32) {
    %c0_i32 = arith.constant 0 : i32
    %c0_i32_0 = arith.constant 0 : i32
    return %arg0, %c0_i32 : i32, i32
  }
}

module attributes {stable_mosaic.version = 11 : i64} {
  func.func @_bn_relu_kernel(%arg0: i32, %arg1: memref<128x8xf32, #tpu.memory_space<vmem>>, %arg2: memref<1x8xf32, #tpu.memory_space<vmem>>, %arg3: memref<1x8xf32, #tpu.memory_space<vmem>>, %arg4: memref<128x8xbf16, #tpu.memory_space<vmem>>) attributes {dimension_semantics = [#tpu.dimension_semantics<parallel>], iteration_bounds = array<i64: 1>, scalar_prefetch = 0 : i64, scratch_operands = 0 : i64, tpu.core_type = #tpu.core_type<tc>, window_params = [{transform_indices = @transform_0, window_bounds = array<i64: 128, 8>}, {pipeline_mode = #tpu.pipeline_mode<synchronous>, transform_indices = @transform_1, window_bounds = array<i64: 1, 8>}, {pipeline_mode = #tpu.pipeline_mode<synchronous>, transform_indices = @transform_2, window_bounds = array<i64: 1, 8>}, {transform_indices = @transform_3, window_bounds = array<i64: 128, 8>}]} {
    %c0 = arith.constant 0 : index
    %c0_0 = arith.constant 0 : index
    %0 = vector.load %arg1[%c0, %c0_0] : memref<128x8xf32, #tpu.memory_space<vmem>>, vector<128x8xf32>
    %c0_1 = arith.constant 0 : index
    %c0_2 = arith.constant 0 : index
    %1 = vector.load %arg2[%c0_1, %c0_2] : memref<1x8xf32, #tpu.memory_space<vmem>>, vector<1x8xf32>
    %2 = vector.broadcast %1 : vector<1x8xf32> to vector<128x8xf32>
    %3 = arith.mulf %0, %2 : vector<128x8xf32>
    %c0_3 = arith.constant 0 : index
    %c0_4 = arith.constant 0 : index
    %4 = vector.load %arg3[%c0_3, %c0_4] : memref<1x8xf32, #tpu.memory_space<vmem>>, vector<1x8xf32>
    %5 = vector.broadcast %4 : vector<1x8xf32> to vector<128x8xf32>
    %6 = arith.addf %3, %5 : vector<128x8xf32>
    %cst = arith.constant 0.000000e+00 : f32
    %7 = vector.broadcast %cst : f32 to vector<128x8xf32>
    %8 = arith.maximumf %6, %7 : vector<128x8xf32>
    %9 = arith.truncf %8 : vector<128x8xf32> to vector<128x8xbf16>
    %c0_5 = arith.constant 0 : index
    %c0_6 = arith.constant 0 : index
    %10 = vector.load %arg4[%c0_5, %c0_6] : memref<128x8xbf16, #tpu.memory_space<vmem>>, vector<128x8xbf16>
    tpu.vector_store %arg4[%c0_5, %c0_6], %9 {strides = array<i32>} : memref<128x8xbf16, #tpu.memory_space<vmem>>, vector<128x8xbf16>,
    return
  }
  func.func @transform_0(%arg0: i32) -> (i32, i32) {
    %c0_i32 = arith.constant 0 : i32
    %c0_i32_0 = arith.constant 0 : i32
    return %arg0, %c0_i32 : i32, i32
  }
  func.func @transform_1(%arg0: i32) -> (i32, i32) {
    %c0_i32 = arith.constant 0 : i32
    %c0_i32_0 = arith.constant 0 : i32
    %c0_i32_1 = arith.constant 0 : i32
    return %c0_i32, %c0_i32_0 : i32, i32
  }
  func.func @transform_2(%arg0: i32) -> (i32, i32) {
    %c0_i32 = arith.constant 0 : i32
    %c0_i32_0 = arith.constant 0 : i32
    %c0_i32_1 = arith.constant 0 : i32
    return %c0_i32, %c0_i32_0 : i32, i32
  }
  func.func @transform_3(%arg0: i32) -> (i32, i32) {
    %c0_i32 = arith.constant 0 : i32
    %c0_i32_0 = arith.constant 0 : i32
    return %arg0, %c0_i32 : i32, i32
  }
}

module attributes {stable_mosaic.version = 11 : i64} {
  func.func @_conv3x3_stats_kernel(%arg0: i32, %arg1: memref<1x10x10x8xbf16, #tpu.memory_space<vmem>>, %arg2: memref<9x8x8xbf16, #tpu.memory_space<vmem>>, %arg3: memref<64x8xf32, #tpu.memory_space<vmem>>, %arg4: memref<8x8xf32, #tpu.memory_space<vmem>>, %arg5: memref<8x8xf32, #tpu.memory_space<vmem>>) attributes {dimension_semantics = [#tpu.dimension_semantics<parallel>], iteration_bounds = array<i64: 2>, scalar_prefetch = 0 : i64, scratch_operands = 0 : i64, tpu.core_type = #tpu.core_type<tc>, window_params = [{transform_indices = @transform_0, window_bounds = array<i64: 1, 10, 10, 8>}, {pipeline_mode = #tpu.pipeline_mode<synchronous>, transform_indices = @transform_1, window_bounds = array<i64: 9, 8, 8>}, {transform_indices = @transform_2, window_bounds = array<i64: 64, 8>}, {transform_indices = @transform_3, window_bounds = array<i64: 8, 8>}, {transform_indices = @transform_4, window_bounds = array<i64: 8, 8>}]} {
    %c0 = arith.constant 0 : index
    %c0_0 = arith.constant 0 : index
    %c0_1 = arith.constant 0 : index
    %c0_2 = arith.constant 0 : index
    %0 = vector.load %arg1[%c0, %c0_0, %c0_1, %c0_2] : memref<1x10x10x8xbf16, #tpu.memory_space<vmem>>, vector<1x10x10x8xbf16>
    %1 = vector.shape_cast %0 : vector<1x10x10x8xbf16> to vector<10x10x8xbf16>
    %2 = arith.extf %1 : vector<10x10x8xbf16> to vector<10x10x8xf32>
    %cst = arith.constant 0.000000e+00 : f32
    %3 = vector.broadcast %cst : f32 to vector<64x8xf32>
    %4 = vector.extract_strided_slice %2 {offsets = [0, 0, 0], sizes = [8, 8, 8], strides = [1, 1, 1]} : vector<10x10x8xf32> to vector<8x8x8xf32>
    %5 = vector.shape_cast %4 : vector<8x8x8xf32> to vector<64x8xf32>
    %6 = arith.truncf %5 : vector<64x8xf32> to vector<64x8xbf16>
    %c0_3 = arith.constant 0 : index
    %c0_4 = arith.constant 0 : index
    %c0_5 = arith.constant 0 : index
    %7 = vector.load %arg2[%c0_3, %c0_4, %c0_5] : memref<9x8x8xbf16, #tpu.memory_space<vmem>>, vector<1x8x8xbf16>
    %8 = vector.shape_cast %7 : vector<1x8x8xbf16> to vector<8x8xbf16>
    %cst_6 = arith.constant dense<0.000000e+00> : vector<64x8xf32>
    %9 = tpu.matmul %6, %8, %cst_6 {dimension_numbers = #tpu.dot_dimension_numbers<[1], [0], [0], [1], [0, 0, 1, 1], [], []>} : vector<64x8xbf16>, vector<8x8xbf16>, vector<64x8xf32> -> vector<64x8xf32>
    %10 = arith.addf %3, %9 : vector<64x8xf32>
    %11 = vector.extract_strided_slice %2 {offsets = [0, 1, 0], sizes = [8, 8, 8], strides = [1, 1, 1]} : vector<10x10x8xf32> to vector<8x8x8xf32>
    %12 = vector.shape_cast %11 : vector<8x8x8xf32> to vector<64x8xf32>
    %13 = arith.truncf %12 : vector<64x8xf32> to vector<64x8xbf16>
    %c1 = arith.constant 1 : index
    %c0_7 = arith.constant 0 : index
    %c0_8 = arith.constant 0 : index
    %14 = vector.load %arg2[%c1, %c0_7, %c0_8] : memref<9x8x8xbf16, #tpu.memory_space<vmem>>, vector<1x8x8xbf16>
    %15 = vector.shape_cast %14 : vector<1x8x8xbf16> to vector<8x8xbf16>
    %cst_9 = arith.constant dense<0.000000e+00> : vector<64x8xf32>
    %16 = tpu.matmul %13, %15, %cst_9 {dimension_numbers = #tpu.dot_dimension_numbers<[1], [0], [0], [1], [0, 0, 1, 1], [], []>} : vector<64x8xbf16>, vector<8x8xbf16>, vector<64x8xf32> -> vector<64x8xf32>
    %17 = arith.addf %10, %16 : vector<64x8xf32>
    %18 = vector.extract_strided_slice %2 {offsets = [0, 2, 0], sizes = [8, 8, 8], strides = [1, 1, 1]} : vector<10x10x8xf32> to vector<8x8x8xf32>
    %19 = vector.shape_cast %18 : vector<8x8x8xf32> to vector<64x8xf32>
    %20 = arith.truncf %19 : vector<64x8xf32> to vector<64x8xbf16>
    %c2 = arith.constant 2 : index
    %c0_10 = arith.constant 0 : index
    %c0_11 = arith.constant 0 : index
    %21 = vector.load %arg2[%c2, %c0_10, %c0_11] : memref<9x8x8xbf16, #tpu.memory_space<vmem>>, vector<1x8x8xbf16>
    %22 = vector.shape_cast %21 : vector<1x8x8xbf16> to vector<8x8xbf16>
    %cst_12 = arith.constant dense<0.000000e+00> : vector<64x8xf32>
    %23 = tpu.matmul %20, %22, %cst_12 {dimension_numbers = #tpu.dot_dimension_numbers<[1], [0], [0], [1], [0, 0, 1, 1], [], []>} : vector<64x8xbf16>, vector<8x8xbf16>, vector<64x8xf32> -> vector<64x8xf32>
    %24 = arith.addf %17, %23 : vector<64x8xf32>
    %25 = vector.extract_strided_slice %2 {offsets = [1, 0, 0], sizes = [8, 8, 8], strides = [1, 1, 1]} : vector<10x10x8xf32> to vector<8x8x8xf32>
    %26 = vector.shape_cast %25 : vector<8x8x8xf32> to vector<64x8xf32>
    %27 = arith.truncf %26 : vector<64x8xf32> to vector<64x8xbf16>
    %c3 = arith.constant 3 : index
    %c0_13 = arith.constant 0 : index
    %c0_14 = arith.constant 0 : index
    %28 = vector.load %arg2[%c3, %c0_13, %c0_14] : memref<9x8x8xbf16, #tpu.memory_space<vmem>>, vector<1x8x8xbf16>
    %29 = vector.shape_cast %28 : vector<1x8x8xbf16> to vector<8x8xbf16>
    %cst_15 = arith.constant dense<0.000000e+00> : vector<64x8xf32>
    %30 = tpu.matmul %27, %29, %cst_15 {dimension_numbers = #tpu.dot_dimension_numbers<[1], [0], [0], [1], [0, 0, 1, 1], [], []>} : vector<64x8xbf16>, vector<8x8xbf16>, vector<64x8xf32> -> vector<64x8xf32>
    %31 = arith.addf %24, %30 : vector<64x8xf32>
    %32 = vector.extract_strided_slice %2 {offsets = [1, 1, 0], sizes = [8, 8, 8], strides = [1, 1, 1]} : vector<10x10x8xf32> to vector<8x8x8xf32>
    %33 = vector.shape_cast %32 : vector<8x8x8xf32> to vector<64x8xf32>
    %34 = arith.truncf %33 : vector<64x8xf32> to vector<64x8xbf16>
    %c4 = arith.constant 4 : index
    %c0_16 = arith.constant 0 : index
    %c0_17 = arith.constant 0 : index
    %35 = vector.load %arg2[%c4, %c0_16, %c0_17] : memref<9x8x8xbf16, #tpu.memory_space<vmem>>, vector<1x8x8xbf16>
    %36 = vector.shape_cast %35 : vector<1x8x8xbf16> to vector<8x8xbf16>
    %cst_18 = arith.constant dense<0.000000e+00> : vector<64x8xf32>
    %37 = tpu.matmul %34, %36, %cst_18 {dimension_numbers = #tpu.dot_dimension_numbers<[1], [0], [0], [1], [0, 0, 1, 1], [], []>} : vector<64x8xbf16>, vector<8x8xbf16>, vector<64x8xf32> -> vector<64x8xf32>
    %38 = arith.addf %31, %37 : vector<64x8xf32>
    %39 = vector.extract_strided_slice %2 {offsets = [1, 2, 0], sizes = [8, 8, 8], strides = [1, 1, 1]} : vector<10x10x8xf32> to vector<8x8x8xf32>
    %40 = vector.shape_cast %39 : vector<8x8x8xf32> to vector<64x8xf32>
    %41 = arith.truncf %40 : vector<64x8xf32> to vector<64x8xbf16>
    %c5 = arith.constant 5 : index
    %c0_19 = arith.constant 0 : index
    %c0_20 = arith.constant 0 : index
    %42 = vector.load %arg2[%c5, %c0_19, %c0_20] : memref<9x8x8xbf16, #tpu.memory_space<vmem>>, vector<1x8x8xbf16>
    %43 = vector.shape_cast %42 : vector<1x8x8xbf16> to vector<8x8xbf16>
    %cst_21 = arith.constant dense<0.000000e+00> : vector<64x8xf32>
    %44 = tpu.matmul %41, %43, %cst_21 {dimension_numbers = #tpu.dot_dimension_numbers<[1], [0], [0], [1], [0, 0, 1, 1], [], []>} : vector<64x8xbf16>, vector<8x8xbf16>, vector<64x8xf32> -> vector<64x8xf32>
    %45 = arith.addf %38, %44 : vector<64x8xf32>
    %46 = vector.extract_strided_slice %2 {offsets = [2, 0, 0], sizes = [8, 8, 8], strides = [1, 1, 1]} : vector<10x10x8xf32> to vector<8x8x8xf32>
    %47 = vector.shape_cast %46 : vector<8x8x8xf32> to vector<64x8xf32>
    %48 = arith.truncf %47 : vector<64x8xf32> to vector<64x8xbf16>
    %c6 = arith.constant 6 : index
    %c0_22 = arith.constant 0 : index
    %c0_23 = arith.constant 0 : index
    %49 = vector.load %arg2[%c6, %c0_22, %c0_23] : memref<9x8x8xbf16, #tpu.memory_space<vmem>>, vector<1x8x8xbf16>
    %50 = vector.shape_cast %49 : vector<1x8x8xbf16> to vector<8x8xbf16>
    %cst_24 = arith.constant dense<0.000000e+00> : vector<64x8xf32>
    %51 = tpu.matmul %48, %50, %cst_24 {dimension_numbers = #tpu.dot_dimension_numbers<[1], [0], [0], [1], [0, 0, 1, 1], [], []>} : vector<64x8xbf16>, vector<8x8xbf16>, vector<64x8xf32> -> vector<64x8xf32>
    %52 = arith.addf %45, %51 : vector<64x8xf32>
    %53 = vector.extract_strided_slice %2 {offsets = [2, 1, 0], sizes = [8, 8, 8], strides = [1, 1, 1]} : vector<10x10x8xf32> to vector<8x8x8xf32>
    %54 = vector.shape_cast %53 : vector<8x8x8xf32> to vector<64x8xf32>
    %55 = arith.truncf %54 : vector<64x8xf32> to vector<64x8xbf16>
    %c7 = arith.constant 7 : index
    %c0_25 = arith.constant 0 : index
    %c0_26 = arith.constant 0 : index
    %56 = vector.load %arg2[%c7, %c0_25, %c0_26] : memref<9x8x8xbf16, #tpu.memory_space<vmem>>, vector<1x8x8xbf16>
    %57 = vector.shape_cast %56 : vector<1x8x8xbf16> to vector<8x8xbf16>
    %cst_27 = arith.constant dense<0.000000e+00> : vector<64x8xf32>
    %58 = tpu.matmul %55, %57, %cst_27 {dimension_numbers = #tpu.dot_dimension_numbers<[1], [0], [0], [1], [0, 0, 1, 1], [], []>} : vector<64x8xbf16>, vector<8x8xbf16>, vector<64x8xf32> -> vector<64x8xf32>
    %59 = arith.addf %52, %58 : vector<64x8xf32>
    %60 = vector.extract_strided_slice %2 {offsets = [2, 2, 0], sizes = [8, 8, 8], strides = [1, 1, 1]} : vector<10x10x8xf32> to vector<8x8x8xf32>
    %61 = vector.shape_cast %60 : vector<8x8x8xf32> to vector<64x8xf32>
    %62 = arith.truncf %61 : vector<64x8xf32> to vector<64x8xbf16>
    %c8 = arith.constant 8 : index
    %c0_28 = arith.constant 0 : index
    %c0_29 = arith.constant 0 : index
    %63 = vector.load %arg2[%c8, %c0_28, %c0_29] : memref<9x8x8xbf16, #tpu.memory_space<vmem>>, vector<1x8x8xbf16>
    %64 = vector.shape_cast %63 : vector<1x8x8xbf16> to vector<8x8xbf16>
    %cst_30 = arith.constant dense<0.000000e+00> : vector<64x8xf32>
    %65 = tpu.matmul %62, %64, %cst_30 {dimension_numbers = #tpu.dot_dimension_numbers<[1], [0], [0], [1], [0, 0, 1, 1], [], []>} : vector<64x8xbf16>, vector<8x8xbf16>, vector<64x8xf32> -> vector<64x8xf32>
    %66 = arith.addf %59, %65 : vector<64x8xf32>
    %c0_31 = arith.constant 0 : index
    %c0_32 = arith.constant 0 : index
    %67 = vector.load %arg3[%c0_31, %c0_32] : memref<64x8xf32, #tpu.memory_space<vmem>>, vector<64x8xf32>
    tpu.vector_store %arg3[%c0_31, %c0_32], %66 {strides = array<i32>} : memref<64x8xf32, #tpu.memory_space<vmem>>, vector<64x8xf32>,
    %cst_33 = arith.constant dense<0.000000e+00> : vector<8xf32>
    %68 = vector.multi_reduction <add>, %66, %cst_33 [0] : vector<64x8xf32> to vector<8xf32>
    %69 = vector.shape_cast %68 : vector<8xf32> to vector<1x8xf32>
    %70 = vector.shape_cast %69 : vector<1x8xf32> to vector<1x8xf32>
    %71 = vector.broadcast %70 : vector<1x8xf32> to vector<8x8xf32>
    %c0_34 = arith.constant 0 : index
    %c0_35 = arith.constant 0 : index
    %72 = vector.load %arg4[%c0_34, %c0_35] : memref<8x8xf32, #tpu.memory_space<vmem>>, vector<8x8xf32>
    tpu.vector_store %arg4[%c0_34, %c0_35], %71 {strides = array<i32>} : memref<8x8xf32, #tpu.memory_space<vmem>>, vector<8x8xf32>,
    %73 = arith.mulf %66, %66 : vector<64x8xf32>
    %cst_36 = arith.constant dense<0.000000e+00> : vector<8xf32>
    %74 = vector.multi_reduction <add>, %73, %cst_36 [0] : vector<64x8xf32> to vector<8xf32>
    %75 = vector.shape_cast %74 : vector<8xf32> to vector<1x8xf32>
    %76 = vector.shape_cast %75 : vector<1x8xf32> to vector<1x8xf32>
    %77 = vector.broadcast %76 : vector<1x8xf32> to vector<8x8xf32>
    %c0_37 = arith.constant 0 : index
    %c0_38 = arith.constant 0 : index
    %78 = vector.load %arg5[%c0_37, %c0_38] : memref<8x8xf32, #tpu.memory_space<vmem>>, vector<8x8xf32>
    tpu.vector_store %arg5[%c0_37, %c0_38], %77 {strides = array<i32>} : memref<8x8xf32, #tpu.memory_space<vmem>>, vector<8x8xf32>,
    return
  }
  func.func @transform_0(%arg0: i32) -> (i32, i32, i32, i32) {
    %c0_i32 = arith.constant 0 : i32
    %c0_i32_0 = arith.constant 0 : i32
    %c0_i32_1 = arith.constant 0 : i32
    %c0_i32_2 = arith.constant 0 : i32
    return %arg0, %c0_i32, %c0_i32_0, %c0_i32_1 : i32, i32, i32, i32
  }
  func.func @transform_1(%arg0: i32) -> (i32, i32, i32) {
    %c0_i32 = arith.constant 0 : i32
    %c0_i32_0 = arith.constant 0 : i32
    %c0_i32_1 = arith.constant 0 : i32
    %c0_i32_2 = arith.constant 0 : i32
    return %c0_i32, %c0_i32_0, %c0_i32_1 : i32, i32, i32
  }
  func.func @transform_2(%arg0: i32) -> (i32, i32) {
    %c0_i32 = arith.constant 0 : i32
    %c0_i32_0 = arith.constant 0 : i32
    return %arg0, %c0_i32 : i32, i32
  }
  func.func @transform_3(%arg0: i32) -> (i32, i32) {
    %c0_i32 = arith.constant 0 : i32
    %c0_i32_0 = arith.constant 0 : i32
    return %arg0, %c0_i32 : i32, i32
  }
  func.func @transform_4(%arg0: i32) -> (i32, i32) {
    %c0_i32 = arith.constant 0 : i32
    %c0_i32_0 = arith.constant 0 : i32
    return %arg0, %c0_i32 : i32, i32
  }
}

module attributes {stable_mosaic.version = 11 : i64} {
  func.func @_gemm_stats_kernel(%arg0: i32, %arg1: memref<128x8xbf16, #tpu.memory_space<vmem>>, %arg2: memref<8x32xbf16, #tpu.memory_space<vmem>>, %arg3: memref<128x32xf32, #tpu.memory_space<vmem>>, %arg4: memref<8x32xf32, #tpu.memory_space<vmem>>, %arg5: memref<8x32xf32, #tpu.memory_space<vmem>>) attributes {dimension_semantics = [#tpu.dimension_semantics<parallel>], iteration_bounds = array<i64: 1>, scalar_prefetch = 0 : i64, scratch_operands = 0 : i64, tpu.core_type = #tpu.core_type<tc>, window_params = [{transform_indices = @transform_0, window_bounds = array<i64: 128, 8>}, {pipeline_mode = #tpu.pipeline_mode<synchronous>, transform_indices = @transform_1, window_bounds = array<i64: 8, 32>}, {transform_indices = @transform_2, window_bounds = array<i64: 128, 32>}, {transform_indices = @transform_3, window_bounds = array<i64: 8, 32>}, {transform_indices = @transform_4, window_bounds = array<i64: 8, 32>}]} {
    %c0 = arith.constant 0 : index
    %c0_0 = arith.constant 0 : index
    %0 = vector.load %arg1[%c0, %c0_0] : memref<128x8xbf16, #tpu.memory_space<vmem>>, vector<128x8xbf16>
    %c0_1 = arith.constant 0 : index
    %c0_2 = arith.constant 0 : index
    %1 = vector.load %arg2[%c0_1, %c0_2] : memref<8x32xbf16, #tpu.memory_space<vmem>>, vector<8x32xbf16>
    %cst = arith.constant dense<0.000000e+00> : vector<128x32xf32>
    %2 = tpu.matmul %0, %1, %cst {dimension_numbers = #tpu.dot_dimension_numbers<[1], [0], [0], [1], [0, 0, 1, 1], [], []>} : vector<128x8xbf16>, vector<8x32xbf16>, vector<128x32xf32> -> vector<128x32xf32>
    %c0_3 = arith.constant 0 : index
    %c0_4 = arith.constant 0 : index
    %3 = vector.load %arg3[%c0_3, %c0_4] : memref<128x32xf32, #tpu.memory_space<vmem>>, vector<128x32xf32>
    tpu.vector_store %arg3[%c0_3, %c0_4], %2 {strides = array<i32>} : memref<128x32xf32, #tpu.memory_space<vmem>>, vector<128x32xf32>,
    %cst_5 = arith.constant dense<0.000000e+00> : vector<32xf32>
    %4 = vector.multi_reduction <add>, %2, %cst_5 [0] : vector<128x32xf32> to vector<32xf32>
    %5 = vector.shape_cast %4 : vector<32xf32> to vector<1x32xf32>
    %6 = vector.shape_cast %5 : vector<1x32xf32> to vector<1x32xf32>
    %7 = vector.broadcast %6 : vector<1x32xf32> to vector<8x32xf32>
    %c0_6 = arith.constant 0 : index
    %c0_7 = arith.constant 0 : index
    %8 = vector.load %arg4[%c0_6, %c0_7] : memref<8x32xf32, #tpu.memory_space<vmem>>, vector<8x32xf32>
    tpu.vector_store %arg4[%c0_6, %c0_7], %7 {strides = array<i32>} : memref<8x32xf32, #tpu.memory_space<vmem>>, vector<8x32xf32>,
    %9 = arith.mulf %2, %2 : vector<128x32xf32>
    %cst_8 = arith.constant dense<0.000000e+00> : vector<32xf32>
    %10 = vector.multi_reduction <add>, %9, %cst_8 [0] : vector<128x32xf32> to vector<32xf32>
    %11 = vector.shape_cast %10 : vector<32xf32> to vector<1x32xf32>
    %12 = vector.shape_cast %11 : vector<1x32xf32> to vector<1x32xf32>
    %13 = vector.broadcast %12 : vector<1x32xf32> to vector<8x32xf32>
    %c0_9 = arith.constant 0 : index
    %c0_10 = arith.constant 0 : index
    %14 = vector.load %arg5[%c0_9, %c0_10] : memref<8x32xf32, #tpu.memory_space<vmem>>, vector<8x32xf32>
    tpu.vector_store %arg5[%c0_9, %c0_10], %13 {strides = array<i32>} : memref<8x32xf32, #tpu.memory_space<vmem>>, vector<8x32xf32>,
    return
  }
  func.func @transform_0(%arg0: i32) -> (i32, i32) {
    %c0_i32 = arith.constant 0 : i32
    %c0_i32_0 = arith.constant 0 : i32
    return %arg0, %c0_i32 : i32, i32
  }
  func.func @transform_1(%arg0: i32) -> (i32, i32) {
    %c0_i32 = arith.constant 0 : i32
    %c0_i32_0 = arith.constant 0 : i32
    %c0_i32_1 = arith.constant 0 : i32
    return %c0_i32, %c0_i32_0 : i32, i32
  }
  func.func @transform_2(%arg0: i32) -> (i32, i32) {
    %c0_i32 = arith.constant 0 : i32
    %c0_i32_0 = arith.constant 0 : i32
    return %arg0, %c0_i32 : i32, i32
  }
  func.func @transform_3(%arg0: i32) -> (i32, i32) {
    %c0_i32 = arith.constant 0 : i32
    %c0_i32_0 = arith.constant 0 : i32
    return %arg0, %c0_i32 : i32, i32
  }
  func.func @transform_4(%arg0: i32) -> (i32, i32) {
    %c0_i32 = arith.constant 0 : i32
    %c0_i32_0 = arith.constant 0 : i32
    return %arg0, %c0_i32 : i32, i32
  }
}

module attributes {stable_mosaic.version = 11 : i64} {
  func.func @_bn_add_relu_kernel(%arg0: i32, %arg1: memref<128x32xf32, #tpu.memory_space<vmem>>, %arg2: memref<1x32xf32, #tpu.memory_space<vmem>>, %arg3: memref<1x32xf32, #tpu.memory_space<vmem>>, %arg4: memref<128x32xf32, #tpu.memory_space<vmem>>, %arg5: memref<128x32xf32, #tpu.memory_space<vmem>>) attributes {dimension_semantics = [#tpu.dimension_semantics<parallel>], iteration_bounds = array<i64: 1>, scalar_prefetch = 0 : i64, scratch_operands = 0 : i64, tpu.core_type = #tpu.core_type<tc>, window_params = [{transform_indices = @transform_0, window_bounds = array<i64: 128, 32>}, {pipeline_mode = #tpu.pipeline_mode<synchronous>, transform_indices = @transform_1, window_bounds = array<i64: 1, 32>}, {pipeline_mode = #tpu.pipeline_mode<synchronous>, transform_indices = @transform_2, window_bounds = array<i64: 1, 32>}, {transform_indices = @transform_3, window_bounds = array<i64: 128, 32>}, {transform_indices = @transform_4, window_bounds = array<i64: 128, 32>}]} {
    %c0 = arith.constant 0 : index
    %c0_0 = arith.constant 0 : index
    %0 = vector.load %arg1[%c0, %c0_0] : memref<128x32xf32, #tpu.memory_space<vmem>>, vector<128x32xf32>
    %c0_1 = arith.constant 0 : index
    %c0_2 = arith.constant 0 : index
    %1 = vector.load %arg2[%c0_1, %c0_2] : memref<1x32xf32, #tpu.memory_space<vmem>>, vector<1x32xf32>
    %2 = vector.broadcast %1 : vector<1x32xf32> to vector<128x32xf32>
    %3 = arith.mulf %0, %2 : vector<128x32xf32>
    %c0_3 = arith.constant 0 : index
    %c0_4 = arith.constant 0 : index
    %4 = vector.load %arg3[%c0_3, %c0_4] : memref<1x32xf32, #tpu.memory_space<vmem>>, vector<1x32xf32>
    %5 = vector.broadcast %4 : vector<1x32xf32> to vector<128x32xf32>
    %6 = arith.addf %3, %5 : vector<128x32xf32>
    %c0_5 = arith.constant 0 : index
    %c0_6 = arith.constant 0 : index
    %7 = vector.load %arg4[%c0_5, %c0_6] : memref<128x32xf32, #tpu.memory_space<vmem>>, vector<128x32xf32>
    %8 = arith.addf %6, %7 : vector<128x32xf32>
    %cst = arith.constant 0.000000e+00 : f32
    %9 = vector.broadcast %cst : f32 to vector<128x32xf32>
    %10 = arith.maximumf %8, %9 : vector<128x32xf32>
    %c0_7 = arith.constant 0 : index
    %c0_8 = arith.constant 0 : index
    %11 = vector.load %arg5[%c0_7, %c0_8] : memref<128x32xf32, #tpu.memory_space<vmem>>, vector<128x32xf32>
    tpu.vector_store %arg5[%c0_7, %c0_8], %10 {strides = array<i32>} : memref<128x32xf32, #tpu.memory_space<vmem>>, vector<128x32xf32>,
    return
  }
  func.func @transform_0(%arg0: i32) -> (i32, i32) {
    %c0_i32 = arith.constant 0 : i32
    %c0_i32_0 = arith.constant 0 : i32
    return %arg0, %c0_i32 : i32, i32
  }
  func.func @transform_1(%arg0: i32) -> (i32, i32) {
    %c0_i32 = arith.constant 0 : i32
    %c0_i32_0 = arith.constant 0 : i32
    %c0_i32_1 = arith.constant 0 : i32
    return %c0_i32, %c0_i32_0 : i32, i32
  }
  func.func @transform_2(%arg0: i32) -> (i32, i32) {
    %c0_i32 = arith.constant 0 : i32
    %c0_i32_0 = arith.constant 0 : i32
    %c0_i32_1 = arith.constant 0 : i32
    return %c0_i32, %c0_i32_0 : i32, i32
  }
  func.func @transform_3(%arg0: i32) -> (i32, i32) {
    %c0_i32 = arith.constant 0 : i32
    %c0_i32_0 = arith.constant 0 : i32
    return %arg0, %c0_i32 : i32, i32
  }
  func.func @transform_4(%arg0: i32) -> (i32, i32) {
    %c0_i32 = arith.constant 0 : i32
    %c0_i32_0 = arith.constant 0 : i32
    return %arg0, %c0_i32 : i32, i32
  }
}

</mosaic_0001>

<bundles_post_ra>
// kernel: bottleneck_pallas.6
= control target key start
LH: loop header
LB: loop body
LE: loop exit
PB: predicated region body
PF: predicated region fallthrough
CT: control target
= control target key end

     0   :  { %vm87_vm0 = vcmask 261120   ;;  %vm209_vm1 = vcmask 64512   ;;  %s589_s1 = inlined_call_operand.vmem [shape: bf16[32,8], index: 1, kind: input, shape index: {}]   ;;  %s590_s0 = inlined_call_operand.vmem [shape: bf16[128,32], index: 0, kind: input, shape index: {}]   ;;  %s591_s2 = inlined_call_operand.vmem [shape: f32[128,8], index: 2, kind: output, shape index: {0}]   ;;  %s592_s3 = inlined_call_operand.vmem [shape: f32[8,8], index: 3, kind: output, shape index: {1}]   ;;  %s593_s4 = inlined_call_operand.vmem [shape: f32[8,8], index: 4, kind: output, shape index: {2}]  }
   0x1   :  { %v382_v0 = vld [vmem:[%s589_s1 + $0x8] sm:$0xff]   ;;  %v383_v1 = vld [vmem:[%s589_s1] sm:$0xff]   ;;  %v386_v4 = vld [vmem:[%s590_s0 + $0x10] sm:$0xff]  }
   0x2   :  { %358 = vmatprep.subr.bf16.mxu0 %v382_v0  ;;  %v384_v2 = vld [vmem:[%s590_s0] sm:$0xff]   ;;  %378 = vmatprep.subr.bf16.mxu1 %v382_v0  ;;  %v385_v3 = vld [vmem:[%s590_s0 + $0x8] sm:$0xff]   ;;  %v390_v7 = vld [vmem:[%s590_s0 + $0x30] sm:$0xff]  }
   0x3   :  { %359 = vmatpush3.bf16.msra.mxu0 %v382_v0  ;;  %380 = vmatpush3.bf16.msra.mxu1 %v382_v0  ;;  %v388_v5 = vld [vmem:[%s590_s0 + $0x20] sm:$0xff]   ;;  %v389_v6 = vld [vmem:[%s590_s0 + $0x28] sm:$0xff]   ;;  %v387_v8 = vld [vmem:[%s590_s0 + $0x18] sm:$0xff]  }
   0x4   :  { %360 = vmatprep.subr.bf16.mxu0 %v383_v1  ;;  %362 = vmatprep.mubr.msk.bf16.mxu0 %vm87_vm0, %v384_v2  ;;  %v391_v9 = vld [vmem:[%s590_s0 + $0x38] sm:$0xff]  }
   0x5   :  { %379 = vmatprep.subr.bf16.mxu1 %v383_v1  ;;  %370 = vmatprep.mubr.msk.bf16.mxu1 %vm87_vm0, %v388_v5 }
   0x7   :  { %361 = vmatpush3.bf16.msra.mxu0 %v383_v1  ;;  %381 = vmatpush3.bf16.msra.mxu1 %v383_v1 }
   0xa   :  { %363 = vmatmul.mubr.msk.bf16.vlgmr.msra.gmra.mxu0 %vm87_vm0, %v385_v3  ;;  %371 = vmatmul.mubr.msk.bf16.vlgmr.msra.gmra.mxu1 %vm87_vm0, %v389_v6 }
   0xb   :  { %366 = vmatprep.mubr.msk.bf16.mxu0 %vm87_vm0, %v386_v4  ;;  %374 = vmatprep.mubr.msk.bf16.mxu1 %vm87_vm0, %v390_v7 }
  0x12   :  { %367 = vmatmul.mubr.msk.bf16.gmra.mxu0 %vm87_vm0, %v387_v8  ;;  %375 = vmatmul.mubr.msk.bf16.gmra.mxu1 %vm87_vm0, %v391_v9 }
  0xca   :  { %v364_v10 = vpop.f32.mrf.mxu0  ;;  %v455_v11 = vpop.f32.mrf.mxu1 }
  0xcb   :  { %212 = vst.msk [vmem:[%s591_s2 + $0x10] sm:$0xff] %vm209_vm1, %v364_v10  ;;  %220 = vst.msk [vmem:[%s591_s2 + $0x50] sm:$0xff] %vm209_vm1, %v455_v11  ;;  %v266_v19 = vmul.f32 %v364_v10, %v364_v10  ;;  %v229_v26 = vsel %vm209_vm1, %v364_v10, 0.0  ;;  %v274_v4 = vmul.f32 %v455_v11, %v455_v11  ;;  %v245_v9 = vsel %vm209_vm1, %v455_v11, 0.0 }
  0xcc   :  { %v146_v12 = vpop.f32.mrf.mxu0  ;;  %v466_v13 = vpop.f32.mrf.mxu1 }
  0xcd   :  { %210 = vst.msk [vmem:[%s591_s2] sm:$0xff] %vm209_vm1, %v146_v12  ;;  %218 = vst.msk [vmem:[%s591_s2 + $0x40] sm:$0xff] %vm209_vm1, %v466_v13  ;;  %v264_v16 = vmul.f32 %v146_v12, %v146_v12  ;;  %v226_v20 = vsel %vm209_vm1, %v146_v12, 0.0  ;;  %v283_v34 = vsel %vm209_vm1, %v266_v19, 0.0  ;;  %v272_v60 = vmul.f32 %v466_v13, %v466_v13 }
  0xce   :  { %v365_v14 = vpop.f32.mrf.mxu0  ;;  %v477_v15 = vpop.f32.mrf.mxu1  ;;  %v241_v0 = vsel %vm209_vm1, %v466_v13, 0.0 }
  0xcf   :  { %213 = vst.msk [vmem:[%s591_s2 + $0x18] sm:$0xff] %vm209_vm1, %v365_v14  ;;  %221 = vst.msk [vmem:[%s591_s2 + $0x58] sm:$0xff] %vm209_vm1, %v477_v15  ;;  %v280_v27 = vsel %vm209_vm1, %v264_v16, 0.0  ;;  %v267_v28 = vmul.f32 %v365_v14, %v365_v14  ;;  %v231_v35 = vsel %vm209_vm1, %v365_v14, 0.0  ;;  %v295_v5 = vsel %vm209_vm1, %v272_v60, 0.0 }
  0xd0   :  { %v149_v17 = vpop.f32.mrf.mxu0  ;;  %v181_v18 = vpop.f32.mrf.mxu1  ;;  %v275_v10 = vmul.f32 %v477_v15, %v477_v15  ;;  %v299_v16 = vsel %vm209_vm1, %v274_v4, 0.0 }
  0xd1   :  { %211 = vst.msk [vmem:[%s591_s2 + $0x8] sm:$0xff] %vm209_vm1, %v149_v17  ;;  %v227_v21 = vsel %vm209_vm1, %v149_v17, 0.0  ;;  %v265_v22 = vmul.f32 %v149_v17, %v149_v17  ;;  %219 = vst.msk [vmem:[%s591_s2 + $0x48] sm:$0xff] %vm209_vm1, %v181_v18  ;;  %v285_v41 = vsel %vm209_vm1, %v267_v28, 0.0  ;;  %v273_v1 = vmul.f32 %v181_v18, %v181_v18 }
  0xd2   :  { %v228_v23 = vadd.f32 %v227_v21, %v226_v20  ;;  %v368_v24 = vpop.f32.mrf.mxu0  ;;  %v498_v25 = vpop.f32.mrf.mxu1  ;;  %v243_v6 = vsel %vm209_vm1, %v181_v18, 0.0  ;;  %v247_v17 = vsel %vm209_vm1, %v477_v15, 0.0  ;;  %v301_v21 = vsel %vm209_vm1, %v275_v10, 0.0 }
  0xd3   :  { %v281_v29 = vsel %vm209_vm1, %v265_v22, 0.0  ;;  %216 = vst.msk [vmem:[%s591_s2 + $0x30] sm:$0xff] %vm209_vm1, %v368_v24  ;;  %224 = vst.msk [vmem:[%s591_s2 + $0x70] sm:$0xff] %vm209_vm1, %v498_v25  ;;  %v270_v47 = vmul.f32 %v368_v24, %v368_v24  ;;  %v237_v53 = vsel %vm209_vm1, %v368_v24, 0.0  ;;  %v297_v12 = vsel %vm209_vm1, %v273_v1, 0.0 }
  0xd4   :  { %v230_v30 = vadd.f32 %v229_v26, %v228_v23  ;;  %v282_v31 = vadd.f32 %v281_v29, %v280_v27  ;;  %v162_v32 = vpop.f32.mrf.mxu0  ;;  %v194_v33 = vpop.f32.mrf.mxu1  ;;  %v278_v26 = vmul.f32 %v498_v25, %v498_v25  ;;  %v253_v15 = vsel %vm209_vm1, %v498_v25, 0.0 }
  0xd5   :  { %214 = vst.msk [vmem:[%s591_s2 + $0x20] sm:$0xff] %vm209_vm1, %v162_v32  ;;  %v268_v36 = vmul.f32 %v162_v32, %v162_v32  ;;  %222 = vst.msk [vmem:[%s591_s2 + $0x60] sm:$0xff] %vm209_vm1, %v194_v33  ;;  %v233_v42 = vsel %vm209_vm1, %v162_v32, 0.0  ;;  %v291_v58 = vsel %vm209_vm1, %v270_v47, 0.0  ;;  %v276_v19 = vmul.f32 %v194_v33, %v194_v33 }
  0xd6   :  { %v284_v37 = vadd.f32 %v283_v34, %v282_v31  ;;  %v232_v38 = vadd.f32 %v231_v35, %v230_v30  ;;  %v369_v39 = vpop.f32.mrf.mxu0  ;;  %v522_v40 = vpop.f32.mrf.mxu1  ;;  %v249_v22 = vsel %vm209_vm1, %v194_v33, 0.0  ;;  %v307_v35 = vsel %vm209_vm1, %v278_v26, 0.0 }
  0xd7   :  { %217 = vst.msk [vmem:[%s591_s2 + $0x38] sm:$0xff] %vm209_vm1, %v369_v39  ;;  %225 = vst.msk [vmem:[%s591_s2 + $0x78] sm:$0xff] %vm209_vm1, %v522_v40  ;;  %v287_v48 = vsel %vm209_vm1, %v268_v36, 0.0  ;;  %v271_v54 = vmul.f32 %v369_v39, %v369_v39  ;;  %v239_v59 = vsel %vm209_vm1, %v369_v39, 0.0  ;;  %v303_v27 = vsel %vm209_vm1, %v276_v19, 0.0 }
  0xd8   :  { %v234_v43 = vadd.f32 %v233_v42, %v232_v38  ;;  %v286_v44 = vadd.f32 %v285_v41, %v284_v37  ;;  %v165_v45 = vpop.f32.mrf.mxu0  ;;  %v197_v46 = vpop.f32.mrf.mxu1  ;;  %v279_v31 = vmul.f32 %v522_v40, %v522_v40  ;;  %v255_v36 = vsel %vm209_vm1, %v522_v40, 0.0 }
  0xd9   :  { %215 = vst.msk [vmem:[%s591_s2 + $0x28] sm:$0xff] %vm209_vm1, %v165_v45  ;;  %v235_v49 = vsel %vm209_vm1, %v165_v45, 0.0  ;;  %v269_v50 = vmul.f32 %v165_v45, %v165_v45  ;;  %223 = vst.msk [vmem:[%s591_s2 + $0x68] sm:$0xff] %vm209_vm1, %v197_v46  ;;  %v293_v63 = vsel %vm209_vm1, %v271_v54, 0.0  ;;  %v277_v11 = vmul.f32 %v197_v46, %v197_v46 }
  0xda   :  { %v288_v51 = vadd.f32 %v287_v48, %v286_v44  ;;  %v236_v52 = vadd.f32 %v235_v49, %v234_v43  ;;  %v251_v28 = vsel %vm209_vm1, %v197_v46, 0.0  ;;  %v309_v39 = vsel %vm209_vm1, %v279_v31, 0.0 }
  0xdb   :  { %v289_v55 = vsel %vm209_vm1, %v269_v50, 0.0  ;;  %v305_v32 = vsel %vm209_vm1, %v277_v11, 0.0 }
  0xdc   :  { %v238_v56 = vadd.f32 %v237_v53, %v236_v52  ;;  %v290_v57 = vadd.f32 %v289_v55, %v288_v51 }
  0xde   :  { %v240_v61 = vadd.f32 %v239_v59, %v238_v56  ;;  %v292_v62 = vadd.f32 %v291_v58, %v290_v57 }
  0xe0   :  { %v294_v2 = vadd.f32 %v293_v63, %v292_v62  ;;  %v242_v3 = vadd.f32 %v241_v0, %v240_v61 }
  0xe2   :  { %v244_v7 = vadd.f32 %v243_v6, %v242_v3  ;;  %v296_v8 = vadd.f32 %v295_v5, %v294_v2 }
  0xe4   :  { %v246_v13 = vadd.f32 %v245_v9, %v244_v7  ;;  %v298_v14 = vadd.f32 %v297_v12, %v296_v8 }
  0xe6   :  { %v300_v20 = vadd.f32 %v299_v16, %v298_v14  ;;  %v248_v18 = vadd.f32 %v247_v17, %v246_v13 }
  0xe8   :  { %v250_v23 = vadd.f32 %v249_v22, %v248_v18  ;;  %v302_v24 = vadd.f32 %v301_v21, %v300_v20 }
  0xea   :  { %v304_v29 = vadd.f32 %v303_v27, %v302_v24  ;;  %v252_v30 = vadd.f32 %v251_v28, %v250_v23 }
  0xec   :  { %v254_v33 = vadd.f32 %v253_v15, %v252_v30  ;;  %v306_v34 = vadd.f32 %v305_v32, %v304_v29 }
  0xee   :  { %v256_v37 = vadd.f32 %v255_v36, %v254_v33  ;;  %v308_v38 = vadd.f32 %v307_v35, %v306_v34 }
  0xf0   :  { %v257_v41 = vrot.slane %v256_v37, 4  ;;  %v310_v42 = vadd.f32 %v309_v39, %v308_v38 }
  0xf2   :  { %v258_v43 = vadd.f32 %v257_v41, %v256_v37  ;;  %v311_v25 = vrot.slane %v310_v42, 4 }
  0xf4   :  { %v259_v44 = vrot.slane %v258_v43, 2  ;;  %v312_v45 = vadd.f32 %v311_v25, %v310_v42 }
  0xf6   :  { %v260_v46 = vadd.f32 %v259_v44, %v258_v43  ;;  %v313_v47 = vrot.slane %v312_v45, 2 }
  0xf8   :  { %v261_v48 = vrot.slane %v260_v46, 1  ;;  %v314_v49 = vadd.f32 %v313_v47, %v312_v45 }
  0xfa   :  { %v262_v50 = vadd.f32 %v261_v48, %v260_v46  ;;  %v315_v51 = vrot.slane %v314_v49, 1 }
  0xfc   :  { %263 = vst.msk [vmem:[%s592_s3] sm:$0xff] %vm209_vm1, %v262_v50  ;;  %v316_v40 = vadd.f32 %v315_v51, %v314_v49 }
  0xfe   :  { %317 = vst.msk [vmem:[%s593_s4] sm:$0xff] %vm209_vm1, %v316_v40 }

// kernel: bottleneck_pallas.7
= control target key start
LH: loop header
LB: loop body
LE: loop exit
PB: predicated region body
PF: predicated region fallthrough
CT: control target
= control target key end

     0   :  { %vm156_vm0 = vcmask 60416   ;;  %s385_s0 = inlined_call_operand.vmem [shape: f32[128,8], index: 0, kind: input, shape index: {}]   ;;  %s386_s1 = inlined_call_operand.vmem [shape: f32[1,8], index: 1, kind: input, shape index: {}]   ;;  %s387_s2 = inlined_call_operand.vmem [shape: f32[1,8], index: 2, kind: input, shape index: {}]   ;;  %s388_s3 = inlined_call_operand.vmem [shape: bf16[128,8], index: 3, kind: output, shape index: {}]  }
   0x1   :  { %v14_v0 = vld [vmem:[%s385_s0] sm:$0xff]  ;;  %v15_v4 = vld [vmem:[%s385_s0 + $0x8] sm:$0xff]  ;;  %v16_v5 = vld [vmem:[%s385_s0 + $0x10] sm:$0xff] }
   0x2   :  { %v237_v1 = vld [vmem:[%s386_s1] ss:$0 sm:$0xff]  ;;  %v17_v6 = vld [vmem:[%s385_s0 + $0x18] sm:$0xff]  ;;  %v19_v11 = vld [vmem:[%s385_s0 + $0x28] sm:$0xff] }
   0x3   :  { %v242_v2 = vld [vmem:[%s387_s2] ss:$0 sm:$0xff]  ;;  %v37_v3 = vmul.f32 %v237_v1, %v14_v0  ;;  %v38_v7 = vmul.f32 %v237_v1, %v15_v4  ;;  %v39_v8 = vmul.f32 %v237_v1, %v16_v5  ;;  %v40_v9 = vmul.f32 %v237_v1, %v17_v6  ;;  %v20_v12 = vld [vmem:[%s385_s0 + $0x30] sm:$0xff]  ;;  %v21_v17 = vld [vmem:[%s385_s0 + $0x38] sm:$0xff] }
   0x4   :  { %v18_v10 = vld [vmem:[%s385_s0 + $0x20] sm:$0xff]  ;;  %v42_v15 = vmul.f32 %v237_v1, %v19_v11  ;;  %v43_v16 = vmul.f32 %v237_v1, %v20_v12  ;;  %v44_v21 = vmul.f32 %v237_v1, %v21_v17  ;;  %v23_v35 = vld [vmem:[%s385_s0 + $0x48] sm:$0xff]  ;;  %v24_v36 = vld [vmem:[%s385_s0 + $0x50] sm:$0xff] }
   0x5   :  { %v60_v13 = vadd.f32 %v242_v2, %v37_v3  ;;  %v41_v14 = vmul.f32 %v237_v1, %v18_v10  ;;  %v61_v18 = vadd.f32 %v242_v2, %v38_v7  ;;  %v62_v19 = vadd.f32 %v242_v2, %v39_v8  ;;  %v22_v30 = vld [vmem:[%s385_s0 + $0x40] sm:$0xff]  ;;  %v25_v37 = vld [vmem:[%s385_s0 + $0x58] sm:$0xff]  ;;  %v27_v43 = vld [vmem:[%s385_s0 + $0x68] sm:$0xff] }
   0x6   :  { %v63_v20 = vadd.f32 %v242_v2, %v40_v9  ;;  %v65_v24 = vadd.f32 %v242_v2, %v42_v15  ;;  %v66_v25 = vadd.f32 %v242_v2, %v43_v16  ;;  %v67_v29 = vadd.f32 %v242_v2, %v44_v21  ;;  %v26_v42 = vld [vmem:[%s385_s0 + $0x60] sm:$0xff]  ;;  %v28_v44 = vld [vmem:[%s385_s0 + $0x70] sm:$0xff]  ;;  %v29_v49 = vld [vmem:[%s385_s0 + $0x78] sm:$0xff] }
   0x7   :  { %v76_v22 = vmax.f32 %v60_v13, 0.0  ;;  %v64_v23 = vadd.f32 %v242_v2, %v41_v14  ;;  %v77_v26 = vmax.f32 %v61_v18, 0.0  ;;  %v78_v27 = vmax.f32 %v62_v19, 0.0 }
   0x8   :  { %v79_v28 = vmax.f32 %v63_v20, 0.0  ;;  %v81_v33 = vmax.f32 %v65_v24, 0.0  ;;  %v82_v34 = vmax.f32 %v66_v25, 0.0  ;;  %v83_v41 = vmax.f32 %v67_v29, 0.0 }
   0x9   :  { %v195_v31 = vpack.c.bf16 %v76_v22, %v76_v22  ;;  %v80_v32 = vmax.f32 %v64_v23, 0.0  ;;  %v196_v38 = vpack.c.bf16 %v77_v26, %v77_v26  ;;  %v197_v39 = vpack.c.bf16 %v78_v27, %v78_v27 }
   0xa   :  { %v198_v40 = vpack.c.bf16 %v79_v28, %v79_v28  ;;  %v200_v46 = vpack.c.bf16 %v81_v33, %v81_v33  ;;  %v201_v47 = vpack.c.bf16 %v82_v34, %v82_v34  ;;  %v45_v48 = vmul.f32 %v237_v1, %v22_v30 }
   0xb   :  { %157 = vst.msk [vmem:[%s388_s3] sm:$0xf] %vm156_vm0, %v195_v31  ;;  %v199_v45 = vpack.c.bf16 %v80_v32, %v80_v32  ;;  %158 = vst.msk [vmem:[%s388_s3 + $0x4] sm:$0xf] %vm156_vm0, %v196_v38  ;;  %v202_v50 = vpack.c.bf16 %v83_v41, %v83_v41  ;;  %v46_v51 = vmul.f32 %v237_v1, %v23_v35 }
   0xc   :  { %159 = vst.msk [vmem:[%s388_s3 + $0x8] sm:$0xf] %vm156_vm0, %v197_v39  ;;  %160 = vst.msk [vmem:[%s388_s3 + $0xc] sm:$0xf] %vm156_vm0, %v198_v40  ;;  %v47_v52 = vmul.f32 %v237_v1, %v24_v36  ;;  %v48_v53 = vmul.f32 %v237_v1, %v25_v37  ;;  %v68_v54 = vadd.f32 %v242_v2, %v45_v48 }
   0xd   :  { %161 = vst.msk [vmem:[%s388_s3 + $0x10] sm:$0xf] %vm156_vm0, %v199_v45  ;;  %162 = vst.msk [vmem:[%s388_s3 + $0x14] sm:$0xf] %vm156_vm0, %v200_v46  ;;  %v49_v55 = vmul.f32 %v237_v1, %v26_v42  ;;  %v50_v56 = vmul.f32 %v237_v1, %v27_v43  ;;  %v51_v57 = vmul.f32 %v237_v1, %v28_v44 }
   0xe   :  { %163 = vst.msk [vmem:[%s388_s3 + $0x18] sm:$0xf] %vm156_vm0, %v201_v47  ;;  %164 = vst.msk [vmem:[%s388_s3 + $0x1c] sm:$0xf] %vm156_vm0, %v202_v50  ;;  %v69_v58 = vadd.f32 %v242_v2, %v46_v51  ;;  %v70_v59 = vadd.f32 %v242_v2, %v47_v52  ;;  %v71_v60 = vadd.f32 %v242_v2, %v48_v53  ;;  %v84_v62 = vmax.f32 %v68_v54, 0.0 }
   0xf   :  { %v52_v61 = vmul.f32 %v237_v1, %v29_v49  ;;  %v72_v63 = vadd.f32 %v242_v2, %v49_v55  ;;  %v73_v0 = vadd.f32 %v242_v2, %v50_v56  ;;  %v74_v3 = vadd.f32 %v242_v2, %v51_v57 }
  0x10   :  { %v85_v4 = vmax.f32 %v69_v58, 0.0  ;;  %v86_v5 = vmax.f32 %v70_v59, 0.0  ;;  %v87_v6 = vmax.f32 %v71_v60, 0.0  ;;  %v203_v8 = vpack.c.bf16 %v84_v62, %v84_v62 }
  0x11   :  { %v75_v7 = vadd.f32 %v242_v2, %v52_v61  ;;  %v88_v9 = vmax.f32 %v72_v63, 0.0  ;;  %v89_v10 = vmax.f32 %v73_v0, 0.0  ;;  %v90_v11 = vmax.f32 %v74_v3, 0.0 }
  0x12   :  { %v204_v12 = vpack.c.bf16 %v85_v4, %v85_v4  ;;  %v205_v13 = vpack.c.bf16 %v86_v5, %v86_v5  ;;  %v206_v14 = vpack.c.bf16 %v87_v6, %v87_v6  ;;  %165 = vst.msk [vmem:[%s388_s3 + $0x20] sm:$0xf] %vm156_vm0, %v203_v8 }
  0x13   :  { %v91_v1 = vmax.f32 %v75_v7, 0.0  ;;  %v207_v15 = vpack.c.bf16 %v88_v9, %v88_v9  ;;  %v208_v16 = vpack.c.bf16 %v89_v10, %v89_v10  ;;  %v209_v17 = vpack.c.bf16 %v90_v11, %v90_v11 }
  0x14   :  { %166 = vst.msk [vmem:[%s388_s3 + $0x24] sm:$0xf] %vm156_vm0, %v204_v12  ;;  %167 = vst.msk [vmem:[%s388_s3 + $0x28] sm:$0xf] %vm156_vm0, %v205_v13 }
  0x15   :  { %168 = vst.msk [vmem:[%s388_s3 + $0x2c] sm:$0xf] %vm156_vm0, %v206_v14  ;;  %v210_v2 = vpack.c.bf16 %v91_v1, %v91_v1  ;;  %169 = vst.msk [vmem:[%s388_s3 + $0x30] sm:$0xf] %vm156_vm0, %v207_v15 }
  0x16   :  { %170 = vst.msk [vmem:[%s388_s3 + $0x34] sm:$0xf] %vm156_vm0, %v208_v16  ;;  %171 = vst.msk [vmem:[%s388_s3 + $0x38] sm:$0xf] %vm156_vm0, %v209_v17 }
  0x17   :  { %172 = vst.msk [vmem:[%s388_s3 + $0x3c] sm:$0xf] %vm156_vm0, %v210_v2 }

// kernel: bottleneck_pallas.10
= control target key start
LH: loop header
LB: loop body
LE: loop exit
PB: predicated region body
PF: predicated region fallthrough
CT: control target
= control target key end

     0   :  { %vm97_vm0 = vcmask 1043456   ;;  %vm72_vm1 = vcmask 64512   ;;  %vm198_vm2 = vcmask 261120   ;;  %s556_s1 = inlined_call_operand.vmem [shape: bf16[8,32], index: 1, kind: input, shape index: {}]   ;;  %s557_s0 = inlined_call_operand.vmem [shape: bf16[128,8], index: 0, kind: input, shape index: {}]   ;;  %s558_s2 = inlined_call_operand.vmem [shape: f32[128,32], index: 2, kind: output, shape index: {0}]   ;;  %s559_s3 = inlined_call_operand.vmem [shape: f32[8,32], index: 3, kind: output, shape index: {1}]   ;;  %s560_s4 = inlined_call_operand.vmem [shape: f32[8,32], index: 4, kind: output, shape index: {2}]  }
   0x1   :  { %v31_v0 = vld [vmem:[%s556_s1] sm:$0xf]  ;;  %v367_v3 = vld [vmem:[%s557_s0 + $0x8] sm:$0xff]   ;;  %v368_v4 = vld [vmem:[%s557_s0 + $0x10] sm:$0xff]  }
   0x2   :  { %364 = vmatprep.subr.msk.bf16.mxu0 %vm97_vm0, %v31_v0  ;;  %v99_v1 = vsel %vm97_vm0, %v31_v0, 0  ;;  %v366_v2 = vld [vmem:[%s557_s0] sm:$0xff]   ;;  %365 = vmatprep.subr.msk.bf16.mxu1 %vm97_vm0, %v31_v0  ;;  %v371_v6 = vld [vmem:[%s557_s0 + $0x28] sm:$0xff]   ;;  %v372_v7 = vld [vmem:[%s557_s0 + $0x30] sm:$0xff]  }
   0x3   :  { %345 = vmatpush3.bf16.msra.mxu0 %v99_v1  ;;  %363 = vmatpush3.bf16.msra.mxu1 %v99_v1  ;;  %v370_v5 = vld [vmem:[%s557_s0 + $0x20] sm:$0xff]   ;;  %v369_v8 = vld [vmem:[%s557_s0 + $0x18] sm:$0xff]  }
   0x4   :  { %346 = vmatprep.mubr.msk.bf16.mxu0 %vm72_vm1, %v366_v2  ;;  %354 = vmatprep.mubr.msk.bf16.mxu1 %vm72_vm1, %v370_v5  ;;  %v373_v9 = vld [vmem:[%s557_s0 + $0x38] sm:$0xff]  }
   0x6   :  { %347 = vmatmul.mubr.msk.bf16.vlgmr.msra.gmra.mxu0 %vm72_vm1, %v367_v3  ;;  %355 = vmatmul.mubr.msk.bf16.vlgmr.msra.gmra.mxu1 %vm72_vm1, %v371_v6 }
   0x7   :  { %350 = vmatprep.mubr.msk.bf16.mxu0 %vm72_vm1, %v368_v4  ;;  %358 = vmatprep.mubr.msk.bf16.mxu1 %vm72_vm1, %v372_v7 }
   0xe   :  { %351 = vmatmul.mubr.msk.bf16.gmra.mxu0 %vm72_vm1, %v369_v8  ;;  %359 = vmatmul.mubr.msk.bf16.gmra.mxu1 %vm72_vm1, %v373_v9 }
  0xc6   :  { %v348_v10 = vpop.f32.mrf.mxu0  ;;  %v442_v12 = vpop.f32.mrf.mxu1 }
  0xc7   :  { %201 = vst.msk [vmem:[%s558_s2 + $0x10] sm:$0xff] %vm198_vm2, %v348_v10  ;;  %209 = vst.msk [vmem:[%s558_s2 + $0x50] sm:$0xff] %vm198_vm2, %v442_v12  ;;  %v255_v17 = vmul.f32 %v348_v10, %v348_v10  ;;  %v218_v24 = vsel %vm198_vm2, %v348_v10, 0.0  ;;  %v263_v4 = vmul.f32 %v442_v12, %v442_v12  ;;  %v234_v9 = vsel %vm198_vm2, %v442_v12, 0.0 }
  0xc8   :  { %v135_v11 = vpop.f32.mrf.mxu0  ;;  %v167_v15 = vpop.f32.mrf.mxu1 }
  0xc9   :  { %199 = vst.msk [vmem:[%s558_s2] sm:$0xff] %vm198_vm2, %v135_v11  ;;  %v253_v14 = vmul.f32 %v135_v11, %v135_v11  ;;  %207 = vst.msk [vmem:[%s558_s2 + $0x40] sm:$0xff] %vm198_vm2, %v167_v15  ;;  %v215_v18 = vsel %vm198_vm2, %v135_v11, 0.0  ;;  %v272_v32 = vsel %vm198_vm2, %v255_v17, 0.0  ;;  %v261_v60 = vmul.f32 %v167_v15, %v167_v15 }
  0xca   :  { %v349_v13 = vpop.f32.mrf.mxu0  ;;  %v463_v21 = vpop.f32.mrf.mxu1  ;;  %v230_v0 = vsel %vm198_vm2, %v167_v15, 0.0  ;;  %v288_v15 = vsel %vm198_vm2, %v263_v4, 0.0 }
  0xcb   :  { %202 = vst.msk [vmem:[%s558_s2 + $0x18] sm:$0xff] %vm198_vm2, %v349_v13  ;;  %210 = vst.msk [vmem:[%s558_s2 + $0x58] sm:$0xff] %vm198_vm2, %v463_v21  ;;  %v269_v25 = vsel %vm198_vm2, %v253_v14, 0.0  ;;  %v256_v26 = vmul.f32 %v349_v13, %v349_v13  ;;  %v220_v33 = vsel %vm198_vm2, %v349_v13, 0.0  ;;  %v284_v5 = vsel %vm198_vm2, %v261_v60, 0.0 }
  0xcc   :  { %v138_v16 = vpop.f32.mrf.mxu0  ;;  %v170_v28 = vpop.f32.mrf.mxu1  ;;  %v264_v10 = vmul.f32 %v463_v21, %v463_v21 }
  0xcd   :  { %200 = vst.msk [vmem:[%s558_s2 + $0x8] sm:$0xff] %vm198_vm2, %v138_v16  ;;  %v216_v19 = vsel %vm198_vm2, %v138_v16, 0.0  ;;  %v254_v20 = vmul.f32 %v138_v16, %v138_v16  ;;  %208 = vst.msk [vmem:[%s558_s2 + $0x48] sm:$0xff] %vm198_vm2, %v170_v28  ;;  %v274_v39 = vsel %vm198_vm2, %v256_v26, 0.0  ;;  %v262_v1 = vmul.f32 %v170_v28, %v170_v28 }
  0xce   :  { %v217_v22 = vadd.f32 %v216_v19, %v215_v18  ;;  %v352_v23 = vpop.f32.mrf.mxu0  ;;  %v487_v35 = vpop.f32.mrf.mxu1  ;;  %v232_v6 = vsel %vm198_vm2, %v170_v28, 0.0  ;;  %v236_v16 = vsel %vm198_vm2, %v463_v21, 0.0 }
  0xcf   :  { %v270_v27 = vsel %vm198_vm2, %v254_v20, 0.0  ;;  %205 = vst.msk [vmem:[%s558_s2 + $0x30] sm:$0xff] %vm198_vm2, %v352_v23  ;;  %213 = vst.msk [vmem:[%s558_s2 + $0x70] sm:$0xff] %vm198_vm2, %v487_v35  ;;  %v259_v45 = vmul.f32 %v352_v23, %v352_v23  ;;  %v226_v52 = vsel %vm198_vm2, %v352_v23, 0.0  ;;  %v286_v11 = vsel %vm198_vm2, %v262_v1, 0.0 }
  0xd0   :  { %v219_v29 = vadd.f32 %v218_v24, %v217_v22  ;;  %v271_v30 = vadd.f32 %v270_v27, %v269_v25  ;;  %v151_v31 = vpop.f32.mrf.mxu0  ;;  %v183_v41 = vpop.f32.mrf.mxu1  ;;  %v290_v20 = vsel %vm198_vm2, %v264_v10, 0.0  ;;  %v267_v25 = vmul.f32 %v487_v35, %v487_v35 }
  0xd1   :  { %203 = vst.msk [vmem:[%s558_s2 + $0x20] sm:$0xff] %vm198_vm2, %v151_v31  ;;  %v257_v34 = vmul.f32 %v151_v31, %v151_v31  ;;  %v222_v40 = vsel %vm198_vm2, %v151_v31, 0.0  ;;  %211 = vst.msk [vmem:[%s558_s2 + $0x60] sm:$0xff] %vm198_vm2, %v183_v41  ;;  %v280_v58 = vsel %vm198_vm2, %v259_v45, 0.0  ;;  %v265_v17 = vmul.f32 %v183_v41, %v183_v41 }
  0xd2   :  { %v273_v36 = vadd.f32 %v272_v32, %v271_v30  ;;  %v221_v37 = vadd.f32 %v220_v33, %v219_v29  ;;  %v353_v38 = vpop.f32.mrf.mxu0  ;;  %v361_v49 = vpop.f32.mrf.mxu1  ;;  %v238_v22 = vsel %vm198_vm2, %v183_v41, 0.0  ;;  %v242_v21 = vsel %vm198_vm2, %v487_v35, 0.0 }
  0xd3   :  { %206 = vst.msk [vmem:[%s558_s2 + $0x38] sm:$0xff] %vm198_vm2, %v353_v38  ;;  %v276_v46 = vsel %vm198_vm2, %v257_v34, 0.0  ;;  %214 = vst.msk [vmem:[%s558_s2 + $0x78] sm:$0xff] %vm198_vm2, %v361_v49  ;;  %v260_v53 = vmul.f32 %v353_v38, %v353_v38  ;;  %v228_v59 = vsel %vm198_vm2, %v353_v38, 0.0  ;;  %v292_v26 = vsel %vm198_vm2, %v265_v17, 0.0 }
  0xd4   :  { %v223_v42 = vadd.f32 %v222_v40, %v221_v37  ;;  %v275_v43 = vadd.f32 %v274_v39, %v273_v36  ;;  %v154_v44 = vpop.f32.mrf.mxu0  ;;  %v186_v55 = vpop.f32.mrf.mxu1  ;;  %v268_v30 = vmul.f32 %v361_v49, %v361_v49  ;;  %v296_v34 = vsel %vm198_vm2, %v267_v25, 0.0 }
  0xd5   :  { %204 = vst.msk [vmem:[%s558_s2 + $0x28] sm:$0xff] %vm198_vm2, %v154_v44  ;;  %v224_v47 = vsel %vm198_vm2, %v154_v44, 0.0  ;;  %v258_v48 = vmul.f32 %v154_v44, %v154_v44  ;;  %212 = vst.msk [vmem:[%s558_s2 + $0x68] sm:$0xff] %vm198_vm2, %v186_v55  ;;  %v282_v63 = vsel %vm198_vm2, %v260_v53, 0.0  ;;  %v266_v12 = vmul.f32 %v186_v55, %v186_v55 }
  0xd6   :  { %v277_v50 = vadd.f32 %v276_v46, %v275_v43  ;;  %v225_v51 = vadd.f32 %v224_v47, %v223_v42  ;;  %v240_v27 = vsel %vm198_vm2, %v186_v55, 0.0  ;;  %v244_v36 = vsel %vm198_vm2, %v361_v49, 0.0 }
  0xd7   :  { %v278_v54 = vsel %vm198_vm2, %v258_v48, 0.0  ;;  %v294_v31 = vsel %vm198_vm2, %v266_v12, 0.0  ;;  %v298_v39 = vsel %vm198_vm2, %v268_v30, 0.0 }
  0xd8   :  { %v227_v56 = vadd.f32 %v226_v52, %v225_v51  ;;  %v279_v57 = vadd.f32 %v278_v54, %v277_v50 }
  0xda   :  { %v229_v61 = vadd.f32 %v228_v59, %v227_v56  ;;  %v281_v62 = vadd.f32 %v280_v58, %v279_v57 }
  0xdc   :  { %v283_v2 = vadd.f32 %v282_v63, %v281_v62  ;;  %v231_v3 = vadd.f32 %v230_v0, %v229_v61 }
  0xde   :  { %v233_v7 = vadd.f32 %v232_v6, %v231_v3  ;;  %v285_v8 = vadd.f32 %v284_v5, %v283_v2 }
  0xe0   :  { %v235_v13 = vadd.f32 %v234_v9, %v233_v7  ;;  %v287_v14 = vadd.f32 %v286_v11, %v285_v8 }
  0xe2   :  { %v289_v18 = vadd.f32 %v288_v15, %v287_v14  ;;  %v237_v19 = vadd.f32 %v236_v16, %v235_v13 }
  0xe4   :  { %v239_v23 = vadd.f32 %v238_v22, %v237_v19  ;;  %v291_v24 = vadd.f32 %v290_v20, %v289_v18 }
  0xe6   :  { %v293_v28 = vadd.f32 %v292_v26, %v291_v24  ;;  %v241_v29 = vadd.f32 %v240_v27, %v239_v23 }
  0xe8   :  { %v243_v32 = vadd.f32 %v242_v21, %v241_v29  ;;  %v295_v33 = vadd.f32 %v294_v31, %v293_v28 }
  0xea   :  { %v245_v37 = vadd.f32 %v244_v36, %v243_v32  ;;  %v297_v38 = vadd.f32 %v296_v34, %v295_v33 }
  0xec   :  { %v246_v40 = vrot.slane %v245_v37, 4  ;;  %v299_v41 = vadd.f32 %v298_v39, %v297_v38 }
  0xee   :  { %v247_v42 = vadd.f32 %v246_v40, %v245_v37  ;;  %v300_v43 = vrot.slane %v299_v41, 4 }
  0xf0   :  { %v248_v44 = vrot.slane %v247_v42, 2  ;;  %v301_v45 = vadd.f32 %v300_v43, %v299_v41 }
  0xf2   :  { %v249_v35 = vadd.f32 %v248_v44, %v247_v42  ;;  %v302_v46 = vrot.slane %v301_v45, 2 }
  0xf4   :  { %v250_v47 = vrot.slane %v249_v35, 1  ;;  %v303_v48 = vadd.f32 %v302_v46, %v301_v45 }
  0xf6   :  { %v251_v50 = vadd.f32 %v250_v47, %v249_v35  ;;  %v304_v51 = vrot.slane %v303_v48, 1 }
  0xf8   :  { %252 = vst.msk [vmem:[%s559_s3] sm:$0xff] %vm198_vm2, %v251_v50  ;;  %v305_v49 = vadd.f32 %v304_v51, %v303_v48 }
  0xfa   :  { %306 = vst.msk [vmem:[%s560_s4] sm:$0xff] %vm198_vm2, %v305_v49 }

// kernel: bottleneck_pallas.8
= control target key start
LH: loop header
LB: loop body
LE: loop exit
PB: predicated region body
PF: predicated region fallthrough
CT: control target
= control target key end

     0   :  { %s1599_s15 = smov 0   ;;  %s1964_s0 = inlined_call_operand.vmem [shape: bf16[2,10,10,8], index: 0, kind: input, shape index: {}]   ;;  %s1965_s1 = inlined_call_operand.vmem [shape: bf16[9,8,8], index: 1, kind: input, shape index: {}]   ;;  %s1966_s2 = inlined_call_operand.vmem [shape: f32[128,8], index: 2, kind: output, shape index: {0}]   ;;  %s1967_s3 = inlined_call_operand.vmem [shape: f32[16,8], index: 3, kind: output, shape index: {1}]   ;;  %s1968_s4 = inlined_call_operand.vmem [shape: f32[16,8], index: 4, kind: output, shape index: {2}]  }
   0x1 LB: > { %s1605_s16 = sadd.s32 4294967295, %s1572_s15   ;;  %p1340_p0 = scmp.ge.s32.totalorder %s1572_s15, 1  ;;  %s1572_s15 = sphi %s1599_s15, %s15_s15  }
   0x2   : > { %p167_p1 = scmp.lt.s32.totalorder %s1572_s15, 3 }
   0x4   : > { %p168_p2 = pnand %p1340_p0, %p167_p1 }
   0x5   : > { %p201_p3 = scmp.lt.s32.totalorder (!%p168_p2), %s1605_s16, 1  ;;  %s1342_s14 = sshll.u32 (!%p168_p2), %s1605_s16, 3 }
   0x6   : > { %171 = sbr.rel (%p168_p2) target bundleno = 322 (0x142), region = 28  ;;  %p207_p4 = scmp.lt.s32.totalorder (!%p168_p2), %s1342_s14, 15 }
   0xb   : > { %v1350_v0 = vld [vmem:[%s1965_s1 + $0x4] sm:$0xf]  ;;  %vm334_vm0 = vcmask 1043456   ;;  %v265_v2 = vld [vmem:[%s1965_s1] sm:$0xf]  ;;  %s1623_s23 = scalar_select %p201_p3, %s1605_s16, 1 }
   0xc   : > { %1539 = vmatprep.subr.msk.bf16.mxu1 %vm334_vm0, %v1350_v0  ;;  %1538 = vmatprep.subr.msk.bf16.mxu0 %vm334_vm0, %v1350_v0  ;;  %v336_v1 = vsel %vm334_vm0, %v1350_v0, 0  ;;  %v1359_v3 = vld [vmem:[%s1965_s1 + $0x8] sm:$0xf]  ;;  %vm282_vm1 = vcmask 1046528   ;;  %vm321_vm2 = vcmask 64512   ;;  %v1634_v4 = vsel %vm334_vm0, %v265_v2, 0 }
   0xd   : > { %1537 = vmatpush3.bf16.msra.mxu1 %v336_v1  ;;  %1447 = vmatpush3.bf16.msra.mxu0 %v336_v1  ;;  %s1548_s24 = smul.u32 80, %s1623_s23  ;;  %v1656_v19 = vsel %vm334_vm0, %v1359_v3, 0  ;;  %vm483_vm3 = vcmask 1045504   ;;  %s1970_s14 = smov (!%p207_p4, %s1342_s14), 15 }
   0xe   : > { %1540 = vmatprep.subr.msk.bf16.mxu1 %vm334_vm0, %v265_v2  ;;  %1541 = vmatprep.subr.msk.bf16.mxu0 %vm334_vm0, %v1359_v3  ;;  %s1343_s16 = sshll.u32 %s1970_s14, 3  ;;  %s1344_s20 = sshll.u32 %s1623_s23, 3 }
   0xf   : > { %s1631_s27 = scalar_lea.vmem %s1964_s0, %s1548_s24  ;;  %s1913_s19 = scalar_lea.vmem %s1966_s2, %s1343_s16 }
  0x10   : > { %v1637_v5 = vld [vmem:[%s1631_s27] sm:$0xf]  ;;  %v222_v6 = vld [vmem:[%s1631_s27 + $0x4] sm:$0x1]  ;;  %v1641_v7 = vld [vmem:[%s1631_s27 + $0x8] sm:$0xf]  ;;  %s215_s24 = scalar_lea.vmem %s1967_s3, %s1344_s20 }
  0x11   : > { %v224_v8 = vld [vmem:[%s1631_s27 + $0xc] sm:$0x1]  ;;  %v1645_v9 = vld [vmem:[%s1631_s27 + $0x10] sm:$0xf]  ;;  %v226_v10 = vld [vmem:[%s1631_s27 + $0x14] sm:$0x1]  ;;  %v241_v11 = vunpack.c.l.bf16 %v1637_v5  ;;  %v242_v12 = vunpack.c.l.bf16 %v222_v6  ;;  %v243_v13 = vunpack.c.l.bf16 %v1641_v7 }
  0x12   : > { %v244_v14 = vunpack.c.l.bf16 %v224_v8  ;;  %v245_v15 = vunpack.c.l.bf16 %v1645_v9  ;;  %v246_v16 = vunpack.c.l.bf16 %v226_v10  ;;  %v1652_v17 = vld [vmem:[%s1631_s27 + $0x18] sm:$0xf]  ;;  %v228_v18 = vld [vmem:[%s1631_s27 + $0x1c] sm:$0x1]  ;;  %v1659_v24 = vld [vmem:[%s1631_s27 + $0x20] sm:$0xf] }
  0x13   : > { %v283_v20 = vrot.slane %v241_v11, 1  ;;  %v284_v21 = vrot.slane %v242_v12, 1  ;;  %v286_v22 = vrot.slane %v243_v13, 1  ;;  %v484_v23 = vrot.slane %v241_v11, 2  ;;  %v230_v29 = vld [vmem:[%s1631_s27 + $0x24] sm:$0x1] }
  0x14   : > { %v287_v25 = vrot.slane %v244_v14, 1  ;;  %v289_v26 = vrot.slane %v245_v15, 1  ;;  %v290_v27 = vrot.slane %v246_v16, 1  ;;  %v485_v28 = vrot.slane %v242_v12, 2  ;;  %v1664_v33 = vld [vmem:[%s1631_s27 + $0x28] sm:$0xf] }
  0x15   : > { %v285_v30 = vsel %vm282_vm1, %v283_v20, %v284_v21  ;;  %v487_v31 = vrot.slane %v243_v13, 2  ;;  %v488_v32 = vrot.slane %v244_v14, 2  ;;  %v232_v34 = vld [vmem:[%s1631_s27 + $0x2c] sm:$0x1]  ;;  %v490_v37 = vrot.slane %v245_v15, 2 }
  0x16   : > { %v1668_v35 = vsel %vm282_vm1, %v286_v22, %v287_v25  ;;  %v1671_v36 = vsel %vm282_vm1, %v289_v26, %v290_v27  ;;  %v1674_v38 = vld [vmem:[%s1631_s27 + $0x30] sm:$0xf]  ;;  %v234_v39 = vld [vmem:[%s1631_s27 + $0x34] sm:$0x1]  ;;  %v247_v40 = vunpack.c.l.bf16 %v1652_v17  ;;  %v491_v42 = vrot.slane %v246_v16, 2 }
  0x17   : > { %v315_v41 = vpack.c.bf16 %v1668_v35, %v285_v30  ;;  %v1680_v43 = vld [vmem:[%s1631_s27 + $0x38] sm:$0xf]  ;;  %v236_v44 = vld [vmem:[%s1631_s27 + $0x3c] sm:$0x1]  ;;  %v248_v45 = vunpack.c.l.bf16 %v228_v18  ;;  %v249_v46 = vunpack.c.l.bf16 %v1659_v24  ;;  %v250_v47 = vunpack.c.l.bf16 %v230_v29  ;;  %v1373_v22 = vld [vmem:[%s1965_s1 + $0x10] sm:$0xf] }
  0x18   : > { %v251_v48 = vunpack.c.l.bf16 %v1664_v33  ;;  %v252_v49 = vunpack.c.l.bf16 %v232_v34  ;;  %v253_v50 = vunpack.c.l.bf16 %v1674_v38  ;;  %v254_v51 = vunpack.c.l.bf16 %v234_v39 }
  0x19   : > { %1448 = vmatprep.mubr.msk.bf16.mxu0 %vm321_vm2, %v315_v41  ;;  %v255_v52 = vunpack.c.l.bf16 %v1680_v43  ;;  %v256_v53 = vunpack.c.l.bf16 %v236_v44  ;;  %v292_v54 = vrot.slane %v247_v40, 1  ;;  %v293_v55 = vrot.slane %v248_v45, 1 }
  0x1a   : > { %v295_v56 = vrot.slane %v249_v46, 1  ;;  %v296_v57 = vrot.slane %v250_v47, 1  ;;  %v298_v58 = vrot.slane %v251_v48, 1  ;;  %v299_v59 = vrot.slane %v252_v49, 1 }
  0x1b   : > { %v301_v60 = vrot.slane %v253_v50, 1  ;;  %v302_v61 = vrot.slane %v254_v51, 1  ;;  %v304_v62 = vrot.slane %v255_v52, 1  ;;  %v1689_v63 = vsel %vm282_vm1, %v292_v54, %v293_v55 }
  0x1c   : > { %v1692_v0 = vsel %vm282_vm1, %v295_v56, %v296_v57  ;;  %v305_v1 = vrot.slane %v256_v53, 1  ;;  %v493_v2 = vrot.slane %v247_v40, 2  ;;  %v1695_v3 = vsel %vm282_vm1, %v298_v58, %v299_v59  ;;  %v1764_v40 = vld [vmem:[%s1631_s27 + $0x48] sm:$0xf]  ;;  %v237_v56 = vld [vmem:[%s1631_s27 + $0x40] sm:$0xf] }
  0x1d   : > { %v1698_v6 = vsel %vm282_vm1, %v301_v60, %v302_v61  ;;  %v1702_v8 = vpack.c.bf16 %v1689_v63, %v1671_v36  ;;  %v494_v10 = vrot.slane %v248_v45, 2  ;;  %v1709_v12 = vpack.c.bf16 %v1695_v3, %v1692_v0  ;;  %v1775_v45 = vld [vmem:[%s1631_s27 + $0x4c] sm:$0x1]  ;;  %v238_v57 = vld [vmem:[%s1631_s27 + $0x44] sm:$0x1]  ;;  %s219_s27 = scalar_lea.vmem %s1968_s4, %s1344_s20 }
  0x1e   : > { %v1705_v11 = vsel %vm282_vm1, %v304_v62, %v305_v1  ;;  %v496_v13 = vrot.slane %v249_v46, 2  ;;  %v1346_v14 = vcombine.low %v1637_v5, %v1641_v7  ;;  %v497_v16 = vrot.slane %v250_v47, 2  ;;  %v1368_v5 = vld [vmem:[%s1965_s1 + $0xc] sm:$0xf] }
  0x1f   : > { %v1715_v15 = vpack.c.bf16 %v1705_v11, %v1698_v6  ;;  %v499_v18 = vrot.slane %v251_v48, 2  ;;  %v500_v20 = vrot.slane %v252_v49, 2  ;;  %1449 = vmatmul.mubr.msk.bf16.vlgmr.msra.gmra.mxu0 %vm321_vm2, %v1702_v8  ;;  %1452 = vmatprep.mubr.msk.bf16.mxu1 %vm321_vm2, %v1709_v12  ;;  %v486_v21 = vsel %vm483_vm3, %v484_v23, %v485_v28  ;;  %v1378_v49 = vld [vmem:[%s1965_s1 + $0x14] sm:$0xf] }
  0x20   : > { %1467 = vmatpush3.bf16.msra.mxu0 %v1656_v19  ;;  %v1732_v25 = vsel %vm483_vm3, %v487_v31, %v488_v32  ;;  %v1735_v26 = vsel %vm483_vm3, %v490_v37, %v491_v42  ;;  %v1738_v19 = vsel %vm483_vm3, %v493_v2, %v494_v10  ;;  %v1750_v28 = vsel %vm483_vm3, %v496_v13, %v497_v16  ;;  %v1384_v42 = vld [vmem:[%s1965_s1 + $0x18] sm:$0xf]  ;;  %v1394_v10 = vld [vmem:[%s1965_s1 + $0x20] sm:$0xf] }
  0x21   : > { %1453 = vmatmul.mubr.msk.bf16.vlgmr.msra.gmra.mxu1 %vm321_vm2, %v1715_v15  ;;  %v516_v23 = vpack.c.bf16 %v1732_v25, %v486_v21  ;;  %v1746_v27 = vpack.c.bf16 %v1738_v19, %v1735_v26  ;;  %1543 = vmatprep.subr.msk.bf16.mxu0 %vm334_vm0, %v1373_v22  ;;  %v1753_v29 = vsel %vm483_vm3, %v499_v18, %v500_v20  ;;  %v503_v31 = vrot.slane %v254_v51, 2 }
  0x22   : > { %1457 = vmatpush3.bf16.msra.mxu1 %v1634_v4  ;;  %1458 = vmatprep.mubr.msk.bf16.mxu1 %vm321_vm2, %v1346_v14  ;;  %v502_v4 = vrot.slane %v253_v50, 2  ;;  %v1758_v30 = vpack.c.bf16 %v1753_v29, %v1750_v28  ;;  %v505_v32 = vrot.slane %v255_v52, 2  ;;  %v506_v34 = vrot.slane %v256_v53, 2 }
  0x23   : > { %1542 = vmatprep.subr.msk.bf16.mxu1 %vm334_vm0, %v1368_v5  ;;  %1468 = vmatprep.mubr.msk.bf16.mxu0 %vm321_vm2, %v516_v23  ;;  %v1347_v37 = vcombine.low %v1645_v9, %v1652_v17  ;;  %v729_v39 = vsel %vm334_vm0, %v1373_v22, 0  ;;  %v1768_v41 = vcombine.low %v1659_v24, %v1664_v33  ;;  %v259_v44 = vunpack.c.l.bf16 %v1764_v40 }
  0x24   : > { %v629_v46 = vsel %vm334_vm0, %v1368_v5, 0  ;;  %v504_v47 = vsel %vm483_vm3, %v502_v4, %v503_v31  ;;  %v1784_v48 = vsel %vm483_vm3, %v505_v32, %v506_v34  ;;  %v260_v51 = vunpack.c.l.bf16 %v1775_v45 }
  0x25   : > { %v986_v50 = vrot.slane %v259_v44, 1  ;;  %v1797_v52 = vpack.c.bf16 %v1784_v48, %v504_v47  ;;  %v710_v54 = vpack.c.bf16 %v1671_v36, %v1668_v35  ;;  %v1349_v55 = vcombine.low %v1674_v38, %v1680_v43 }
  0x26   : > { %v987_v53 = vrot.slane %v260_v51, 1  ;;  %v1364_v59 = vcombine.low %v1641_v7, %v1645_v9  ;;  %v257_v60 = vunpack.c.l.bf16 %v237_v56  ;;  %v258_v61 = vunpack.c.l.bf16 %v238_v57 }
  0x27   : > { %1469 = vmatmul.mubr.msk.bf16.vlgmr.msra.gmra.mxu0 %vm321_vm2, %v1746_v27  ;;  %v711_v35 = vpack.c.bf16 %v1692_v0, %v1689_v63  ;;  %v712_v36 = vpack.c.bf16 %v1698_v6, %v1695_v3  ;;  %v1365_v7 = vcombine.low %v1652_v17, %v1659_v24  ;;  %v909_v9 = vsel %vm334_vm0, %v1384_v42, 0  ;;  %v1389_v17 = vld [vmem:[%s1965_s1 + $0x1c] sm:$0xf] }
  0x28   : > { %1487 = vmatpush3.bf16.msra.mxu0 %v729_v39  ;;  %1472 = vmatprep.mubr.msk.bf16.mxu0 %vm321_vm2, %v1758_v30  ;;  %v1809_v58 = vsel %vm282_vm1, %v986_v50, %v987_v53  ;;  %v706_v62 = vrot.slane %v257_v60, 1  ;;  %v707_v1 = vrot.slane %v258_v61, 1  ;;  %v1366_v2 = vcombine.low %v1664_v33, %v1674_v38 }
  0x29   : > { %1459 = vmatmul.mubr.msk.bf16.vlgmr.msra.gmra.mxu1 %vm321_vm2, %v1347_v37  ;;  %1545 = vmatprep.subr.msk.bf16.mxu0 %vm334_vm0, %v1384_v42  ;;  %v827_v63 = vsel %vm334_vm0, %v1378_v49, 0  ;;  %v1367_v33 = vcombine.low %v1680_v43, %v237_v56  ;;  %v808_v38 = vpack.c.bf16 %v1735_v26, %v1732_v25  ;;  %v809_v3 = vpack.c.bf16 %v1750_v28, %v1738_v19 }
  0x2a   : > { %1477 = vmatpush3.bf16.msra.mxu1 %v629_v46  ;;  %1462 = vmatprep.mubr.msk.bf16.mxu1 %vm321_vm2, %v1768_v41  ;;  %v708_v0 = vsel %vm282_vm1, %v706_v62, %v707_v1  ;;  %v1083_v6 = vsel %vm334_vm0, %v1394_v10, 0  ;;  %v804_v13 = vrot.slane %v257_v60, 2  ;;  %v805_v43 = vrot.slane %v258_v61, 2 }
  0x2b   : > { %1544 = vmatprep.subr.msk.bf16.mxu1 %vm334_vm0, %v1378_v49  ;;  %v713_v24 = vpack.c.bf16 %v708_v0, %v1705_v11  ;;  %v810_v11 = vpack.c.bf16 %v504_v47, %v1753_v29  ;;  %v997_v14 = vsel %vm334_vm0, %v1389_v17, 0  ;;  %v1383_v18 = vcombine.low %v237_v56, %v1764_v40 }
  0x2c   : > { %v806_v16 = vsel %vm483_vm3, %v804_v13, %v805_v43  ;;  %v1072_v21 = vrot.slane %v259_v44, 2  ;;  %v1073_v5 = vrot.slane %v260_v51, 2  ;;  %v990_v25 = vpack.c.bf16 %v1809_v58, %v708_v0 }
  0x2d   : > { %v811_v20 = vpack.c.bf16 %v806_v16, %v1784_v48 }
  0x2e   : > { %v1074_v22 = vsel %vm483_vm3, %v1072_v21, %v1073_v5 }
  0x2f   : > { %1473 = vmatmul.mubr.msk.bf16.gmra.mxu0 %vm321_vm2, %v1797_v52 }
  0x30   : > { %1488 = vmatprep.mubr.msk.bf16.mxu0 %vm321_vm2, %v710_v54 }
  0x31   : > { %1463 = vmatmul.mubr.msk.bf16.gmra.mxu1 %vm321_vm2, %v1349_v55 }
  0x32   : > { %1478 = vmatprep.mubr.msk.bf16.mxu1 %vm321_vm2, %v1364_v59 }
  0x37   : > { %1489 = vmatmul.mubr.msk.bf16.vlgmr.msra.gmra.mxu0 %vm321_vm2, %v711_v35 }
  0x38   : > { %1507 = vmatpush3.bf16.msra.mxu0 %v909_v9  ;;  %1492 = vmatprep.mubr.msk.bf16.mxu0 %vm321_vm2, %v712_v36 }
  0x39   : > { %1479 = vmatmul.mubr.msk.bf16.vlgmr.msra.gmra.mxu1 %vm321_vm2, %v1365_v7  ;;  %1547 = vmatprep.subr.msk.bf16.mxu0 %vm334_vm0, %v1394_v10 }
  0x3a   : > { %1497 = vmatpush3.bf16.msra.mxu1 %v827_v63  ;;  %1482 = vmatprep.mubr.msk.bf16.mxu1 %vm321_vm2, %v1366_v2 }
  0x3b   : > { %1546 = vmatprep.subr.msk.bf16.mxu1 %vm334_vm0, %v1389_v17 }
  0x3f   : > { %1493 = vmatmul.mubr.msk.bf16.gmra.mxu0 %vm321_vm2, %v713_v24 }
  0x40   : > { %1508 = vmatprep.mubr.msk.bf16.mxu0 %vm321_vm2, %v1347_v37 }
  0x41   : > { %1483 = vmatmul.mubr.msk.bf16.gmra.mxu1 %vm321_vm2, %v1367_v33 }
  0x42   : > { %1498 = vmatprep.mubr.msk.bf16.mxu1 %vm321_vm2, %v808_v38 }
  0x47   : > { %1509 = vmatmul.mubr.msk.bf16.vlgmr.msra.gmra.mxu0 %vm321_vm2, %v1768_v41 }
  0x48   : > { %1527 = vmatpush3.bf16.msra.mxu0 %v1083_v6  ;;  %1512 = vmatprep.mubr.msk.bf16.mxu0 %vm321_vm2, %v1349_v55 }
  0x49   : > { %1499 = vmatmul.mubr.msk.bf16.vlgmr.msra.gmra.mxu1 %vm321_vm2, %v809_v3 }
  0x4a   : > { %1517 = vmatpush3.bf16.msra.mxu1 %v997_v14  ;;  %1502 = vmatprep.mubr.msk.bf16.mxu1 %vm321_vm2, %v810_v11 }
  0x4f   : > { %1513 = vmatmul.mubr.msk.bf16.gmra.mxu0 %vm321_vm2, %v1383_v18 }
  0x50   : > { %1528 = vmatprep.mubr.msk.bf16.mxu0 %vm321_vm2, %v1746_v27 }
  0x51   : > { %1503 = vmatmul.mubr.msk.bf16.gmra.mxu1 %vm321_vm2, %v811_v20 }
  0x52   : > { %1518 = vmatprep.mubr.msk.bf16.mxu1 %vm321_vm2, %v1702_v8  ;;  %v1076_v8 = vpack.c.bf16 %v1074_v22, %v806_v16 }
  0x57   : > { %1529 = vmatmul.mubr.msk.bf16.vlgmr.msra.gmra.mxu0 %vm321_vm2, %v1758_v30 }
  0x58   : > { %1532 = vmatprep.mubr.msk.bf16.mxu0 %vm321_vm2, %v1797_v52 }
  0x59   : > { %1519 = vmatmul.mubr.msk.bf16.vlgmr.msra.gmra.mxu1 %vm321_vm2, %v1709_v12 }
  0x5a   : > { %1522 = vmatprep.mubr.msk.bf16.mxu1 %vm321_vm2, %v1715_v15 }
  0x5f   : > { %1533 = vmatmul.mubr.msk.bf16.gmra.mxu0 %vm321_vm2, %v1076_v8 }
  0x61   : > { %1523 = vmatmul.mubr.msk.bf16.gmra.mxu1 %vm321_vm2, %v990_v25 }
  0xdf   : > { %v1450_v26 = vpop.f32.mrf.mxu0 }
  0xe1   : > { %v1454_v19 = vpop.f32.mrf.mxu1  ;;  %v372_v23 = vpop.f32.mrf.mxu0 }
  0xe3   : > { %v388_v27 = vpop.f32.mrf.mxu1  ;;  %v1451_v28 = vpop.f32.mrf.mxu0 }
  0xe5   : > { %v1884_v29 = vpop.f32.mrf.mxu1  ;;  %v375_v4 = vpop.f32.mrf.mxu0 }
  0xe7   : > { %v1886_v30 = vpop.f32.mrf.mxu1  ;;  %v1470_v12 = vpop.f32.mrf.mxu0 }
  0xe9   : > { %v1460_v31 = vpop.f32.mrf.mxu1  ;;  %v571_v15 = vpop.f32.mrf.mxu0 }
  0xea   : > { %v461_v9 = vadd.f32 %v1460_v31, %v1450_v26 }
  0xeb   : > { %v452_v32 = vpop.f32.mrf.mxu1  ;;  %v1471_v34 = vpop.f32.mrf.mxu0 }
  0xec   : > { %v453_v63 = vadd.f32 %v452_v32, %v372_v23  ;;  %v604_v24 = vadd.f32 %v1470_v12, %v461_v9 }
  0xed   : > { %v1461_v37 = vpop.f32.mrf.mxu1  ;;  %v574_v39 = vpop.f32.mrf.mxu0 }
  0xee   : > { %v464_v33 = vadd.f32 %v1461_v37, %v1451_v28  ;;  %v602_v6 = vadd.f32 %v571_v15, %v453_v63 }
  0xef   : > { %v455_v40 = vpop.f32.mrf.mxu1  ;;  %v1474_v41 = vpop.f32.mrf.mxu0 }
  0xf0   : > { %v456_v13 = vadd.f32 %v455_v40, %v375_v4  ;;  %v605_v16 = vadd.f32 %v1471_v34, %v464_v33 }
  0xf1   : > { %v1464_v42 = vpop.f32.mrf.mxu1  ;;  %v587_v44 = vpop.f32.mrf.mxu0 }
  0xf2   : > { %v477_v18 = vadd.f32 %v1464_v42, %v1454_v19  ;;  %v603_v26 = vadd.f32 %v574_v39, %v456_v13 }
  0xf3   : > { %v468_v45 = vpop.f32.mrf.mxu1  ;;  %v1888_v46 = vpop.f32.mrf.mxu0 }
  0xf4   : > { %v469_v21 = vadd.f32 %v468_v45, %v388_v27  ;;  %v608_v12 = vadd.f32 %v1474_v41, %v477_v18 }
  0xf5   : > { %v1465_v47 = vpop.f32.mrf.mxu1  ;;  %v1890_v48 = vpop.f32.mrf.mxu0 }
  0xf6   : > { %v606_v4 = vadd.f32 %v587_v44, %v469_v21  ;;  %v480_v19 = vadd.f32 %v1465_v47, %v1884_v29 }
  0xf7   : > { %v471_v49 = vpop.f32.mrf.mxu1  ;;  %v1490_v50 = vpop.f32.mrf.mxu0 }
  0xf8   : > { %v472_v32 = vadd.f32 %v471_v49, %v1886_v30 }
  0xf9   : > { %v1480_v51 = vpop.f32.mrf.mxu1  ;;  %v765_v52 = vpop.f32.mrf.mxu0 }
  0xfa   : > { %v698_v11 = vadd.f32 %v1480_v51, %v604_v24  ;;  %v607_v44 = vadd.f32 %v1890_v48, %v472_v32 }
  0xfb   : > { %v665_v53 = vpop.f32.mrf.mxu1  ;;  %v1491_v54 = vpop.f32.mrf.mxu0 }
  0xfc   : > { %v696_v20 = vadd.f32 %v665_v53, %v602_v6  ;;  %v798_v8 = vadd.f32 %v1490_v50, %v698_v11  ;;  %v609_v53 = vadd.f32 %v1888_v46, %v480_v19 }
  0xfd   : > { %v1481_v55 = vpop.f32.mrf.mxu1  ;;  %v768_v56 = vpop.f32.mrf.mxu0 }
  0xfe   : > { %v699_v25 = vadd.f32 %v1481_v55, %v605_v16  ;;  %v796_v31 = vadd.f32 %v765_v52, %v696_v20 }
  0xff   : > { %v668_v57 = vpop.f32.mrf.mxu1  ;;  %v1494_v58 = vpop.f32.mrf.mxu0 }
 0x100   : > { %v697_v27 = vadd.f32 %v668_v57, %v603_v26  ;;  %v799_v40 = vadd.f32 %v1491_v54, %v699_v25 }
 0x101   : > { %v1484_v59 = vpop.f32.mrf.mxu1  ;;  %v781_v60 = vpop.f32.mrf.mxu0 }
 0x102   : > { %v702_v39 = vadd.f32 %v1484_v59, %v608_v12  ;;  %v797_v29 = vadd.f32 %v768_v56, %v697_v27 }
 0x103   : > { %v681_v61 = vpop.f32.mrf.mxu1  ;;  %v1892_v35 = vpop.f32.mrf.mxu0 }
 0x104   : > { %v700_v45 = vadd.f32 %v681_v61, %v606_v4  ;;  %v802_v49 = vadd.f32 %v1494_v58, %v702_v39 }
 0x105   : > { %v1485_v36 = vpop.f32.mrf.mxu1  ;;  %v1894_v62 = vpop.f32.mrf.mxu0 }
 0x106   : > { %v800_v9 = vadd.f32 %v781_v60, %v700_v45  ;;  %v703_v54 = vadd.f32 %v1485_v36, %v609_v53 }
 0x107   : > { %v684_v1 = vpop.f32.mrf.mxu1  ;;  %v1510_v7 = vpop.f32.mrf.mxu0 }
 0x108   : > { %v701_v59 = vadd.f32 %v684_v1, %v607_v44  ;;  %v803_v1 = vadd.f32 %v1892_v35, %v703_v54 }
 0x109   : > { %v1500_v2 = vpop.f32.mrf.mxu1  ;;  %v945_v10 = vpop.f32.mrf.mxu0 }
 0x10a   : > { %v896_v15 = vadd.f32 %v1500_v2, %v798_v8 }
 0x10b   : > { %v863_v0 = vpop.f32.mrf.mxu1  ;;  %v1511_v17 = vpop.f32.mrf.mxu0 }
 0x10c   : > { %v894_v42 = vadd.f32 %v863_v0, %v796_v31  ;;  %v978_v51 = vadd.f32 %v1510_v7, %v896_v15 }
 0x10d   : > { %v1501_v38 = vpop.f32.mrf.mxu1  ;;  %v1896_v3 = vpop.f32.mrf.mxu0 }
 0x10e   : > { %v897_v52 = vadd.f32 %v1501_v38, %v799_v40  ;;  %v976_v55 = vadd.f32 %v945_v10, %v894_v42 }
 0x10f   : > { %v866_v43 = vpop.f32.mrf.mxu1  ;;  %v1514_v14 = vpop.f32.mrf.mxu0 }
 0x110   : > { %v895_v2 = vadd.f32 %v866_v43, %v797_v29  ;;  %v979_v7 = vadd.f32 %v1511_v17, %v897_v52  ;;  %v801_v17 = vadd.f32 %v1894_v62, %v701_v59 }
 0x111   : > { %v1504_v5 = vpop.f32.mrf.mxu1  ;;  %v961_v22 = vpop.f32.mrf.mxu0 }
 0x112   : > { %v900_v48 = vadd.f32 %v1504_v5, %v802_v49  ;;  %v977_v24 = vadd.f32 %v1896_v3, %v895_v2 }
 0x113   : > { %v879_v23 = vpop.f32.mrf.mxu1  ;;  %v1899_v28 = vpop.f32.mrf.mxu0 }
 0x114   : > { %v898_v0 = vadd.f32 %v879_v23, %v800_v9  ;;  %v982_v6 = vadd.f32 %v1514_v14, %v900_v48 }
 0x115   : > { %v1505_v34 = vpop.f32.mrf.mxu1  ;;  %v1905_v37 = vpop.f32.mrf.mxu0 }
 0x116   : > { %v901_v13 = vadd.f32 %v1505_v34, %v803_v1  ;;  %v980_v18 = vadd.f32 %v961_v22, %v898_v0 }
 0x117   : > { %v882_v50 = vpop.f32.mrf.mxu1  ;;  %v1530_v41 = vpop.f32.mrf.mxu0 }
 0x118   : > { %v899_v20 = vadd.f32 %v882_v50, %v801_v17  ;;  %v983_v26 = vadd.f32 %v1899_v28, %v901_v13 }
 0x119   : > { %v1520_v47 = vpop.f32.mrf.mxu1  ;;  %v1119_v30 = vpop.f32.mrf.mxu0 }
 0x11a   : > { %v1066_v57 = vadd.f32 %v1520_v47, %v978_v51  ;;  %v981_v15 = vadd.f32 %v1905_v37, %v899_v20 }
 0x11b   : > { %v1033_v61 = vpop.f32.mrf.mxu1  ;;  %v1531_v46 = vpop.f32.mrf.mxu0 }
 0x11c   : > { %v1152_v56 = vadd.f32 %v1530_v41, %v1066_v57  ;;  %v1064_v63 = vadd.f32 %v1033_v61, %v976_v55 }
 0x11d   : > { %v1521_v58 = vpop.f32.mrf.mxu1  ;;  %v1122_v10 = vpop.f32.mrf.mxu0 }
 0x11e   : > { %1160 = vst.msk [vmem:[%s1913_s19 + $0x10] sm:$0xff] %vm321_vm2, %v1152_v56  ;;  %v1150_v60 = vadd.f32 %v1119_v30, %v1064_v63  ;;  %v1067_v36 = vadd.f32 %v1521_v58, %v979_v7  ;;  %v1190_v25 = vmul.f32 %v1152_v56, %v1152_v56  ;;  %v1169_v4 = vsel %vm321_vm2, %v1152_v56, 0.0 }
 0x11f   : > { %v1036_v33 = vpop.f32.mrf.mxu1  ;;  %v1534_v38 = vpop.f32.mrf.mxu0 }
 0x120   : > { %1158 = vst.msk [vmem:[%s1913_s19] sm:$0xff] %vm321_vm2, %v1150_v60  ;;  %v1153_v11 = vadd.f32 %v1531_v46, %v1067_v36  ;;  %v1065_v43 = vadd.f32 %v1036_v33, %v977_v24  ;;  %v1188_v3 = vmul.f32 %v1150_v60, %v1150_v60  ;;  %v1166_v23 = vsel %vm321_vm2, %v1150_v60, 0.0 }
 0x121   : > { %v1524_v16 = vpop.f32.mrf.mxu1  ;;  %v1135_v35 = vpop.f32.mrf.mxu0  ;;  %v1199_v45 = vsel %vm321_vm2, %v1190_v25, 0.0 }
 0x122   : > { %1161 = vst.msk [vmem:[%s1913_s19 + $0x18] sm:$0xff] %vm321_vm2, %v1153_v11  ;;  %v1070_v21 = vadd.f32 %v1524_v16, %v982_v6  ;;  %v1151_v5 = vadd.f32 %v1122_v10, %v1065_v43  ;;  %v1196_v28 = vsel %vm321_vm2, %v1188_v3, 0.0  ;;  %v1191_v34 = vmul.f32 %v1153_v11, %v1153_v11 }
 0x123   : > { %v1049_v8 = vpop.f32.mrf.mxu1  ;;  %v1535_v27 = vpop.f32.mrf.mxu0  ;;  %v1171_v37 = vsel %vm321_vm2, %v1153_v11, 0.0 }
 0x124   : > { %v1156_v62 = vadd.f32 %v1534_v38, %v1070_v21  ;;  %v1068_v14 = vadd.f32 %v1049_v8, %v980_v18  ;;  %1159 = vst.msk [vmem:[%s1913_s19 + $0x8] sm:$0xff] %vm321_vm2, %v1151_v5  ;;  %v1167_v22 = vsel %vm321_vm2, %v1151_v5, 0.0  ;;  %v1189_v12 = vmul.f32 %v1151_v5, %v1151_v5 }
 0x125   : > { %v1525_v31 = vpop.f32.mrf.mxu1  ;;  %v1168_v19 = vadd.f32 %v1167_v22, %v1166_v23  ;;  %v1138_v47 = vpop.f32.mrf.mxu0  ;;  %v1201_v30 = vsel %vm321_vm2, %v1191_v34, 0.0 }
 0x126   : > { %1164 = vst.msk [vmem:[%s1913_s19 + $0x30] sm:$0xff] %vm321_vm2, %v1156_v62  ;;  %v1154_v32 = vadd.f32 %v1135_v35, %v1068_v14  ;;  %v1197_v40 = vsel %vm321_vm2, %v1189_v12, 0.0  ;;  %v1071_v39 = vadd.f32 %v1525_v31, %v983_v26  ;;  %v1194_v54 = vmul.f32 %v1156_v62, %v1156_v62 }
 0x127   : > { %v1052_v42 = vpop.f32.mrf.mxu1  ;;  %v1170_v50 = vadd.f32 %v1169_v4, %v1168_v19  ;;  %v1198_v41 = vadd.f32 %v1197_v40, %v1196_v28  ;;  %v1177_v48 = vsel %vm321_vm2, %v1156_v62, 0.0 }
 0x128   : > { %1162 = vst.msk [vmem:[%s1913_s19 + $0x20] sm:$0xff] %vm321_vm2, %v1154_v32  ;;  %v1192_v51 = vmul.f32 %v1154_v32, %v1154_v32  ;;  %v1157_v52 = vadd.f32 %v1535_v27, %v1071_v39  ;;  %v1069_v53 = vadd.f32 %v1052_v42, %v981_v15  ;;  %v1173_v49 = vsel %vm321_vm2, %v1154_v32, 0.0 }
 0x129   : > { %v1200_v44 = vadd.f32 %v1199_v45, %v1198_v41  ;;  %v1172_v29 = vadd.f32 %v1171_v37, %v1170_v50  ;;  %v1207_v0 = vsel %vm321_vm2, %v1194_v54, 0.0 }
 0x12a   : > { %1165 = vst.msk [vmem:[%s1913_s19 + $0x38] sm:$0xff] %vm321_vm2, %v1157_v52  ;;  %v1155_v55 = vadd.f32 %v1138_v47, %v1069_v53  ;;  %v1203_v59 = vsel %vm321_vm2, %v1192_v51, 0.0  ;;  %v1195_v56 = vmul.f32 %v1157_v52, %v1157_v52  ;;  %v1179_v60 = vsel %vm321_vm2, %v1157_v52, 0.0 }
 0x12b   : > { %v1174_v57 = vadd.f32 %v1173_v49, %v1172_v29  ;;  %v1202_v9 = vadd.f32 %v1201_v30, %v1200_v44 }
 0x12c   : > { %1163 = vst.msk [vmem:[%s1913_s19 + $0x28] sm:$0xff] %vm321_vm2, %v1155_v55  ;;  %v1175_v2 = vsel %vm321_vm2, %v1155_v55, 0.0  ;;  %v1193_v61 = vmul.f32 %v1155_v55, %v1155_v55  ;;  %v1209_v24 = vsel %vm321_vm2, %v1195_v56, 0.0 }
 0x12d   : > { %v1204_v46 = vadd.f32 %v1203_v59, %v1202_v9  ;;  %v1176_v7 = vadd.f32 %v1175_v2, %v1174_v57 }
 0x12e   : > { %v1205_v63 = vsel %vm321_vm2, %v1193_v61, 0.0 }
 0x12f   : > { %v1178_v58 = vadd.f32 %v1177_v48, %v1176_v7  ;;  %v1206_v10 = vadd.f32 %v1205_v63, %v1204_v46 }
 0x131   : > { %v1180_v36 = vadd.f32 %v1179_v60, %v1178_v58  ;;  %v1208_v1 = vadd.f32 %v1207_v0, %v1206_v10 }
 0x133   : > { %v1181_v33 = vrot.slane %v1180_v36, 4  ;;  %v1210_v38 = vadd.f32 %v1209_v24, %v1208_v1 }
 0x135   : > { %v1182_v17 = vadd.f32 %v1181_v33, %v1180_v36  ;;  %v1211_v6 = vrot.slane %v1210_v38, 4 }
 0x137   : > { %v1183_v11 = vrot.slane %v1182_v17, 2  ;;  %v1212_v13 = vadd.f32 %v1211_v6, %v1210_v38 }
 0x139   : > { %v1184_v43 = vadd.f32 %v1183_v11, %v1182_v17  ;;  %v1213_v16 = vrot.slane %v1212_v13, 2 }
 0x13b   : > { %v1185_v18 = vrot.slane %v1184_v43, 1  ;;  %v1214_v20 = vadd.f32 %v1213_v16, %v1212_v13 }
 0x13d   : > { %v1186_v21 = vadd.f32 %v1185_v18, %v1184_v43  ;;  %v1215_v35 = vrot.slane %v1214_v20, 1 }
 0x13f   : > { %1187 = vst.msk [vmem:[%s215_s24] sm:$0xff] %vm321_vm2, %v1186_v21  ;;  %v1216_v3 = vadd.f32 %v1215_v35, %v1214_v20 }
 0x141   : > { %1217 = vst.msk [vmem:[%s219_s27] sm:$0xff] %vm321_vm2, %v1216_v3 }
 0x142 PF: > { %s15_s15 = sadd.s32 1, %s1572_s15  }
 0x143   : > { %p12_p5 = scmp.ge.s32.totalorder %s15_s15, 4  }
 0x145   :  { %14 = sbr.rel (!%p12_p5) target bundleno = 1 (0x1), region = 90 }

// kernel: bottleneck_pallas.11
= control target key start
LH: loop header
LB: loop body
LE: loop exit
PB: predicated region body
PF: predicated region fallthrough
CT: control target
= control target key end

     0   :  { %vm128_vm0 = vcmask 261120   ;;  %s373_s0 = inlined_call_operand.vmem [shape: f32[128,32], index: 0, kind: input, shape index: {}]   ;;  %s374_s1 = inlined_call_operand.vmem [shape: f32[1,32], index: 1, kind: input, shape index: {}]   ;;  %s375_s2 = inlined_call_operand.vmem [shape: f32[1,32], index: 2, kind: input, shape index: {}]   ;;  %s376_s3 = inlined_call_operand.vmem [shape: f32[128,32], index: 3, kind: input, shape index: {}]   ;;  %s377_s4 = inlined_call_operand.hbm [shape: f32[128,32], index: 4, kind: output, shape index: {}]  }
   0x1   :  { %v18_v0 = vld [vmem:[%s373_s0] sm:$0xff]  ;;  %v19_v4 = vld [vmem:[%s373_s0 + $0x8] sm:$0xff]  ;;  %v20_v7 = vld [vmem:[%s373_s0 + $0x10] sm:$0xff] }
   0x2   :  { %v222_v1 = vld [vmem:[%s374_s1] ss:$0 sm:$0xff]  ;;  %v21_v8 = vld [vmem:[%s373_s0 + $0x18] sm:$0xff]  ;;  %v81_v10 = vld [vmem:[%s376_s3 + $0x8] sm:$0xff] }
   0x3   :  { %v227_v2 = vld [vmem:[%s375_s2] ss:$0 sm:$0xff]  ;;  %v41_v3 = vmul.f32 %v222_v1, %v18_v0  ;;  %v42_v6 = vmul.f32 %v222_v1, %v19_v4  ;;  %v43_v11 = vmul.f32 %v222_v1, %v20_v7  ;;  %v82_v12 = vld [vmem:[%s376_s3 + $0x10] sm:$0xff]  ;;  %v44_v13 = vmul.f32 %v222_v1, %v21_v8  ;;  %v83_v16 = vld [vmem:[%s376_s3 + $0x18] sm:$0xff] }
   0x4   :  { %v80_v5 = vld [vmem:[%s376_s3] sm:$0xff]  ;;  %v23_v18 = vld [vmem:[%s373_s0 + $0x28] sm:$0xff]  ;;  %v24_v19 = vld [vmem:[%s373_s0 + $0x30] sm:$0xff] }
   0x5   :  { %v64_v9 = vadd.f32 %v227_v2, %v41_v3  ;;  %v22_v14 = vld [vmem:[%s373_s0 + $0x20] sm:$0xff]  ;;  %v65_v15 = vadd.f32 %v227_v2, %v42_v6  ;;  %v66_v21 = vadd.f32 %v227_v2, %v43_v11  ;;  %v67_v22 = vadd.f32 %v227_v2, %v44_v13  ;;  %v25_v25 = vld [vmem:[%s373_s0 + $0x38] sm:$0xff]  ;;  %v85_v28 = vld [vmem:[%s376_s3 + $0x28] sm:$0xff] }
   0x6   :  { %v45_v17 = vmul.f32 %v222_v1, %v22_v14  ;;  %v84_v23 = vld [vmem:[%s376_s3 + $0x20] sm:$0xff]  ;;  %v46_v24 = vmul.f32 %v222_v1, %v23_v18  ;;  %v47_v29 = vmul.f32 %v222_v1, %v24_v19  ;;  %v48_v30 = vmul.f32 %v222_v1, %v25_v25  ;;  %v86_v36 = vld [vmem:[%s376_s3 + $0x30] sm:$0xff]  ;;  %v87_v37 = vld [vmem:[%s376_s3 + $0x38] sm:$0xff] }
   0x7   :  { %v96_v20 = vadd.f32 %v80_v5, %v64_v9  ;;  %v97_v26 = vadd.f32 %v81_v10, %v65_v15  ;;  %v26_v31 = vld [vmem:[%s373_s0 + $0x40] sm:$0xff]  ;;  %v98_v33 = vadd.f32 %v82_v12, %v66_v21  ;;  %v99_v34 = vadd.f32 %v83_v16, %v67_v22  ;;  %v27_v38 = vld [vmem:[%s373_s0 + $0x48] sm:$0xff]  ;;  %v28_v43 = vld [vmem:[%s373_s0 + $0x50] sm:$0xff] }
   0x8   :  { %v68_v27 = vadd.f32 %v227_v2, %v45_v17  ;;  %v69_v35 = vadd.f32 %v227_v2, %v46_v24  ;;  %v70_v41 = vadd.f32 %v227_v2, %v47_v29  ;;  %v71_v42 = vadd.f32 %v227_v2, %v48_v30  ;;  %v29_v44 = vld [vmem:[%s373_s0 + $0x58] sm:$0xff]  ;;  %v30_v49 = vld [vmem:[%s373_s0 + $0x60] sm:$0xff]  ;;  %v89_v55 = vld [vmem:[%s376_s3 + $0x48] sm:$0xff] }
   0x9   :  { %v112_v32 = vmax.f32 %v96_v20, 0.0  ;;  %v113_v39 = vmax.f32 %v97_v26, 0.0  ;;  %v114_v45 = vmax.f32 %v98_v33, 0.0  ;;  %v115_v46 = vmax.f32 %v99_v34, 0.0  ;;  %v88_v53 = vld [vmem:[%s376_s3 + $0x40] sm:$0xff]  ;;  %v31_v56 = vld [vmem:[%s373_s0 + $0x68] sm:$0xff] }
   0xa   :  { %v100_v40 = vadd.f32 %v84_v23, %v68_v27  ;;  %v101_v47 = vadd.f32 %v85_v28, %v69_v35  ;;  %v49_v48 = vmul.f32 %v222_v1, %v26_v31  ;;  %v102_v51 = vadd.f32 %v86_v36, %v70_v41  ;;  %v32_v61 = vld [vmem:[%s373_s0 + $0x70] sm:$0xff]  ;;  %v33_v62 = vld [vmem:[%s373_s0 + $0x78] sm:$0xff] }
   0xb   :  { %129 = vst.msk [vmem:[#allocation2] sm:$0xff] %vm128_vm0, %v112_v32  ;;  %130 = vst.msk [vmem:[#allocation2 + $0x8] sm:$0xff] %vm128_vm0, %v113_v39  ;;  %v103_v52 = vadd.f32 %v87_v37, %v71_v42  ;;  %v50_v54 = vmul.f32 %v222_v1, %v27_v38  ;;  %v51_v59 = vmul.f32 %v222_v1, %v28_v43 }
   0xc   :  { %v116_v50 = vmax.f32 %v100_v40, 0.0  ;;  %131 = vst.msk [vmem:[#allocation2 + $0x10] sm:$0xff] %vm128_vm0, %v114_v45  ;;  %132 = vst.msk [vmem:[#allocation2 + $0x18] sm:$0xff] %vm128_vm0, %v115_v46  ;;  %v117_v57 = vmax.f32 %v101_v47, 0.0  ;;  %v72_v58 = vadd.f32 %v227_v2, %v49_v48  ;;  %v52_v60 = vmul.f32 %v222_v1, %v29_v44 }
   0xd   :  { %9 = vsyncpa [#allocation3], 0  ;;  %v118_v63 = vmax.f32 %v102_v51, 0.0  ;;  %v119_v0 = vmax.f32 %v103_v52, 0.0  ;;  %v73_v3 = vadd.f32 %v227_v2, %v50_v54  ;;  %v90_v4 = vld [vmem:[%s376_s3 + $0x50] sm:$0xff]  ;;  %v91_v5 = vld [vmem:[%s376_s3 + $0x58] sm:$0xff]  ;;  %v53_v6 = vmul.f32 %v222_v1, %v30_v49 }
   0xe   :  { %133 = vst.msk [vmem:[#allocation2 + $0x20] sm:$0xff] %vm128_vm0, %v116_v50  ;;  %134 = vst.msk [vmem:[#allocation2 + $0x28] sm:$0xff] %vm128_vm0, %v117_v57  ;;  %v104_v7 = vadd.f32 %v88_v53, %v72_v58  ;;  %v74_v8 = vadd.f32 %v227_v2, %v51_v59  ;;  %v75_v9 = vadd.f32 %v227_v2, %v52_v60  ;;  %v92_v10 = vld [vmem:[%s376_s3 + $0x60] sm:$0xff]  ;;  %v93_v14 = vld [vmem:[%s376_s3 + $0x68] sm:$0xff]  ;;  %s188_s1 = smov [#allocation2]  }
   0xf   :  { %v54_v11 = vmul.f32 %v222_v1, %v31_v56  ;;  %135 = vst.msk [vmem:[#allocation2 + $0x30] sm:$0xff] %vm128_vm0, %v118_v63  ;;  %136 = vst.msk [vmem:[#allocation2 + $0x38] sm:$0xff] %vm128_vm0, %v119_v0  ;;  %v105_v12 = vadd.f32 %v89_v55, %v73_v3  ;;  %v76_v13 = vadd.f32 %v227_v2, %v53_v6  ;;  %v94_v21 = vld [vmem:[%s376_s3 + $0x70] sm:$0xff]  ;;  %v95_v22 = vld [vmem:[%s376_s3 + $0x78] sm:$0xff]  ;;  %s150_s26 = sshll.u32 %s188_s1, 4  ;;  %s151_s26 = int_to_ptr.vmem [resolvable:$true] %s150_s26 }
  0x10   :  { %v55_v15 = vmul.f32 %v222_v1, %v32_v61  ;;  %v56_v16 = vmul.f32 %v222_v1, %v33_v62  ;;  %v120_v17 = vmax.f32 %v104_v7, 0.0  ;;  %v106_v18 = vadd.f32 %v90_v4, %v74_v8  ;;  %s166_s3 = scalar_lea.vmem %s151_s26, 2048  ;;  %p171_p1 = scmp.lt.s32.totalorder %s151_s26, %s151_s26 }
  0x11   :  { %v107_v19 = vadd.f32 %v91_v5, %v75_v9  ;;  %v77_v20 = vadd.f32 %v227_v2, %v54_v11  ;;  %v121_v23 = vmax.f32 %v105_v12, 0.0  ;;  %v108_v24 = vadd.f32 %v92_v10, %v76_v13  ;;  %p167_p0 = scmp.ne.s32.totalorder %s151_s26, %s166_s3  ;;  %p172_p2 = scmp.lt.s32.totalorder %s166_s3, %s166_s3 }
  0x12   :  { %v78_v25 = vadd.f32 %v227_v2, %v55_v15  ;;  %v79_v26 = vadd.f32 %v227_v2, %v56_v16  ;;  %137 = vst.msk [vmem:[#allocation2 + $0x40] sm:$0xff] %vm128_vm0, %v120_v17  ;;  %v122_v1 = vmax.f32 %v106_v18, 0.0 }
  0x13   :  { %v123_v27 = vmax.f32 %v107_v19, 0.0  ;;  %v109_v28 = vadd.f32 %v93_v14, %v77_v20  ;;  %138 = vst.msk [vmem:[#allocation2 + $0x48] sm:$0xff] %vm128_vm0, %v121_v23  ;;  %v124_v29 = vmax.f32 %v108_v24, 0.0  ;;  %p173_p3 = por %p172_p2, %p171_p1 }
  0x14   :  { %v110_v30 = vadd.f32 %v94_v21, %v78_v25  ;;  %v111_v31 = vadd.f32 %v95_v22, %v79_v26  ;;  %139 = vst.msk [vmem:[#allocation2 + $0x50] sm:$0xff] %vm128_vm0, %v122_v1 }
  0x15   :  { %140 = vst.msk [vmem:[#allocation2 + $0x58] sm:$0xff] %vm128_vm0, %v123_v27  ;;  %v125_v32 = vmax.f32 %v109_v28, 0.0  ;;  %141 = vst.msk [vmem:[#allocation2 + $0x60] sm:$0xff] %vm128_vm0, %v124_v29  ;;  %p174_p4 = pnand %p173_p3, %p167_p0 }
  0x16   :  { %v126_v2 = vmax.f32 %v110_v30, 0.0  ;;  %v127_v33 = vmax.f32 %v111_v31, 0.0 }
  0x17   :  { %142 = vst.msk [vmem:[#allocation2 + $0x68] sm:$0xff] %vm128_vm0, %v125_v32 }
  0x18   :  { %143 = vst.msk [vmem:[#allocation2 + $0x70] sm:$0xff] %vm128_vm0, %v126_v2  ;;  %144 = vst.msk [vmem:[#allocation2 + $0x78] sm:$0xff] %vm128_vm0, %v127_v33 }
  0x19   :  { %177 = shalt.err (!%p174_p4)
}
  0x1a   :  { %s189_s27 = smov 128   ;;  %s190_s2 = smov 8  }
  0x1b   :  { %156 = dma.vmem_to_hbm [thread:$0]  %s151_s26, 2048, %s377_s4, [#allocation3], %s189_s27, %s189_s27, %s190_s2  }
  0x1c   :  { %186 = dma.done.wait [#allocation3], 2048  }
  0x1d   :  { %187 = vsyncadd [#allocation3], 4294965248 }
  0x1e   :  { %160 = vsyncpa [#allocation3], 1 }

</bundles_post_ra>
